<compile_context>
chip_gen: v7x
topology: tpu7x:2x2x1
jax: 0.10.0
libtpu: 0.0.40
codegen_flags: <defaults>
</compile_context>

<pallas_src>
import math
import jax
import jax.numpy as jnp
from jax.experimental import pallas as pl
from jax.experimental.pallas import tpu as pltpu

# ----------------------------- config -------------------------------------
VOCAB = 64          # vocab_size_img
D     = 32          # embed_dim
NH    = 4           # n_heads
HD    = D // NH     # head dim
T     = 16          # ctx_len_img
L     = 2           # n_layers
HID   = 4 * D       # mlp hidden
EPS   = 1e-5        # nn.LayerNorm default
VPAD  = ((VOCAB + 127) // 128) * 128   # lane-dense logits width (=128)

assert 3 * D <= 128 and HID <= 128, "small-param packing assumes <=128 lanes"


def _ln(x):
    # LayerNorm with gamma/beta already folded into the following linear.
    mu  = jnp.mean(x, axis=-1, keepdims=True)
    var = jnp.mean((x - mu) ** 2, axis=-1, keepdims=True)
    return (x - mu) * jax.lax.rsqrt(var + EPS)


def _gelu_approx(x):
    # story-dalle GELU(use_approx=True): x * sigmoid(1.702 * x)
    return x * jax.nn.sigmoid(1.702 * x)


# ------------------------ fused per-batch kernel ----------------------------
def igpt_kernel(x_ref, wqkv_ref, wo_ref, w1_ref, w2_ref,
                small_ref, whead_ref, hbias_ref, out_ref):
    h = x_ref[0]                                     # (T, D) f32 hidden state
    scale = 1.0 / math.sqrt(HD)

    # In-kernel causal additive mask (loop-invariant, no HBM mask DMA).
    row = jax.lax.broadcasted_iota(jnp.int32, (T, T), 0)
    col = jax.lax.broadcasted_iota(jnp.int32, (T, T), 1)
    neg = jnp.where(col <= row, 0.0, -1e30).astype(jnp.float32)

    for l in range(L):                               # unrolled, static l
        sp   = small_ref[l]                          # (8, 128) packed biases
        bqkv = sp[0, :3 * D]
        bo   = sp[1, :D]
        b1   = sp[2, :HID]
        b2   = sp[3, :D]

        # ---- causal multi-head self-attention (per-head score blocks) ----
        hn  = _ln(h)
        qkv = jnp.dot(hn.astype(jnp.bfloat16), wqkv_ref[l],
                      preferred_element_type=jnp.float32) + bqkv   # (T, 3D)
        heads = []
        for hh in range(NH):                         # static per-head loop
            q_h = qkv[:, hh * HD:(hh + 1) * HD].astype(jnp.bfloat16)
            k_h = qkv[:, D + hh * HD:D + (hh + 1) * HD].astype(jnp.bfloat16)
            v_h = qkv[:, 2 * D + hh * HD:2 * D + (hh + 1) * HD].astype(jnp.bfloat16)
            s = jax.lax.dot_general(q_h, k_h, (((1,), (1,)), ((), ())),
                                    preferred_element_type=jnp.float32)  # (T, T)
            s = s * scale + neg
            # in-place softmax; EUP reciprocal instead of a divide
            s = jnp.exp(s - jnp.max(s, axis=-1, keepdims=True))
            p = s * pl.reciprocal(jnp.sum(s, axis=-1, keepdims=True), approx=True)
            heads.append(jnp.dot(p.astype(jnp.bfloat16), v_h,
                                 preferred_element_type=jnp.float32))    # (T, HD)
        y = jnp.concatenate(heads, axis=-1)                              # (T, D)
        y = jnp.dot(y.astype(jnp.bfloat16), wo_ref[l],
                    preferred_element_type=jnp.float32) + bo
        h = h + y

        # ---- MLP ----------------------------------------------------------
        hn2 = _ln(h)
        m = jnp.dot(hn2.astype(jnp.bfloat16), w1_ref[l],
                    preferred_element_type=jnp.float32) + b1
        m = _gelu_approx(m)
        m = jnp.dot(m.astype(jnp.bfloat16), w2_ref[l],
                    preferred_element_type=jnp.float32) + b2
        h = h + m

    # ---- final LayerNorm (folded) + vocab head (lane-dense 128-wide) -------
    hn = _ln(h)
    logits = jnp.dot(hn.astype(jnp.bfloat16), whead_ref[...],
                     preferred_element_type=jnp.float32) + hbias_ref[0]
    out_ref[0] = logits


# ------------------------------ wrapper -------------------------------------
def igpt_forward(codes, params):
    """codes: (B, T) int32 image tokens; returns logits (B, T, VOCAB) float32."""
    B, Tc = codes.shape
    assert Tc == T
    tok = jnp.take(params['tok_emb'], codes, axis=0)             # (B, T, D)
    pos = params['pos_emb'][None, :, :]                          # (1, T, D)
    h = tok + pos
    sos = jnp.broadcast_to(params['sos'], (B, 1, D))             # use_cls_cond=False
    h = jnp.concatenate([sos, h[:, :-1]], axis=1).astype(jnp.float32)
    # self.drop: identity in eval mode

    logits_pad = pl.pallas_call(
        igpt_kernel,
        out_shape=jax.ShapeDtypeStruct((B, T, VPAD), jnp.float32),
        grid_spec=pltpu.PrefetchScalarGridSpec(
            num_scalar_prefetch=0,
            grid=(B,),
            in_specs=[
                pl.BlockSpec((1, T, D),       lambda b: (b, 0, 0)),  # activations
                pl.BlockSpec((L, D, 3 * D),   lambda b: (0, 0, 0)),  # wqkv (bf16)
                pl.BlockSpec((L, D, D),       lambda b: (0, 0, 0)),  # wo   (bf16)
                pl.BlockSpec((L, D, HID),     lambda b: (0, 0, 0)),  # w1   (bf16)
                pl.BlockSpec((L, HID, D),     lambda b: (0, 0, 0)),  # w2   (bf16)
                pl.BlockSpec((L, 8, 128),     lambda b: (0, 0, 0)),  # packed biases
                pl.BlockSpec((D, VPAD),       lambda b: (0, 0)),     # head weight
                pl.BlockSpec((1, VPAD),       lambda b: (0, 0)),     # head bias
            ],
            out_specs=pl.BlockSpec((1, T, VPAD), lambda b: (b, 0, 0)),
        ),
        compiler_params=pltpu.CompilerParams(
            dimension_semantics=("parallel",),   # megacore sharding on v7x
        ),
    )(h, params['wqkv'], params['wo'], params['w1'], params['w2'],
      params['small'], params['w_head_pad'], params['head_bias'])
    return logits_pad[:, :, :VOCAB]


# -------------------------- deterministic params ----------------------------
def init_params(key):
    ks = jax.random.split(key, 10)
    nrm = lambda k, shape, std=0.02: (jax.random.normal(k, shape) * std).astype(jnp.float32)

    p = {}
    p['sos']     = jax.random.normal(ks[0], (1, 1, D)).astype(jnp.float32)  # torch.randn
    p['tok_emb'] = nrm(ks[1], (VOCAB, D))
    p['pos_emb'] = nrm(ks[2], (T, D))

    # packed QKV projection weight: columns [Wq | Wk | Wv], stored (in, out)
    wq = nrm(ks[3], (L, D, D)); wk = nrm(ks[4], (L, D, D)); wv = nrm(ks[5], (L, D, D))
    wqkv = jnp.concatenate([wq, wk, wv], axis=-1)                 # (L, D, 3D)
    wo   = nrm(ks[6], (L, D, D))
    w1   = nrm(ks[7], (L, D, HID))
    w2   = nrm(ks[8], (L, HID, D))
    w_head = nrm(ks[9], (D, VOCAB))                               # Linear(D, VOCAB, bias=False)

    # LayerNorm params (PyTorch _init_weights: gamma=1, beta=0) and biases (=0)
    ln1_g = jnp.ones((L, D), jnp.float32); ln1_b = jnp.zeros((L, D), jnp.float32)
    ln2_g = jnp.ones((L, D), jnp.float32); ln2_b = jnp.zeros((L, D), jnp.float32)
    lnf_g = jnp.ones((D,), jnp.float32);   lnf_b = jnp.zeros((D,), jnp.float32)
    bqkv = jnp.zeros((L, 3 * D), jnp.float32)
    bo   = jnp.zeros((L, D), jnp.float32)
    b1   = jnp.zeros((L, HID), jnp.float32)
    b2   = jnp.zeros((L, D), jnp.float32)

    # ---- fold LayerNorm affines into the following linear ------------------
    wqkv_f = ln1_g[:, :, None] * wqkv
    bqkv_f = jnp.einsum('ld,ldo->lo', ln1_b, wqkv) + bqkv
    w1_f   = ln2_g[:, :, None] * w1
    b1_f   = jnp.einsum('ld,ldo->lo', ln2_b, w1) + b1
    w_head_f  = lnf_g[:, None] * w_head
    head_bias = lnf_b @ w_head                                    # (VOCAB,)

    # bf16 MXU operands (f32 accumulation in-kernel)
    p['wqkv'] = wqkv_f.astype(jnp.bfloat16)
    p['wo']   = wo.astype(jnp.bfloat16)
    p['w1']   = w1_f.astype(jnp.bfloat16)
    p['w2']   = w2.astype(jnp.bfloat16)
    p['w_head_pad'] = jnp.pad(w_head_f, ((0, 0), (0, VPAD - VOCAB))).astype(jnp.bfloat16)
    p['head_bias']  = jnp.pad(head_bias, (0, VPAD - VOCAB)).reshape(1, VPAD).astype(jnp.float32)

    # all tiny per-layer biases packed into one (L, 8, 128) f32 tile
    def lane_pad(x):                                              # (L, n) -> (L, 128)
        return jnp.pad(x, ((0, 0), (0, 128 - x.shape[-1])))
    zrow = jnp.zeros((L, 128), jnp.float32)
    rows = [
        lane_pad(bqkv_f),   # 0: bq|bk|bv (LN1-folded)
        lane_pad(bo),       # 1: attn proj bias
        lane_pad(b1_f),     # 2: mlp fc bias (LN2-folded)
        lane_pad(b2),       # 3: mlp proj bias
        zrow, zrow, zrow, zrow,
    ]
    p['small'] = jnp.stack(rows, axis=1).astype(jnp.float32)      # (L, 8, 128)
    return p


if __name__ == "__main__":
    key = jax.random.PRNGKey(0)
    pkey, ckey = jax.random.split(key)
    params = init_params(pkey)
    codes = jax.random.randint(ckey, (2, T), 0, VOCAB, dtype=jnp.int32)  # (B=2, T=16)

    logits = jax.jit(igpt_forward)(codes, params)
    jax.block_until_ready(logits)
    assert logits.shape == (2, T, VOCAB) and logits.dtype == jnp.float32
    assert bool(jnp.all(jnp.isfinite(logits)))
    print("KERNEL_OK")
</pallas_src>

<mosaic_0001>
module attributes {stable_mosaic.version = 11 : i64} {
  func.func @igpt_kernel(%arg0: i32, %arg1: memref<1x16x32xf32, #tpu.memory_space<vmem>>, %arg2: memref<2x32x96xbf16, #tpu.memory_space<vmem>>, %arg3: memref<2x32x32xbf16, #tpu.memory_space<vmem>>, %arg4: memref<2x32x128xbf16, #tpu.memory_space<vmem>>, %arg5: memref<2x128x32xbf16, #tpu.memory_space<vmem>>, %arg6: memref<2x8x128xf32, #tpu.memory_space<vmem>>, %arg7: memref<32x128xbf16, #tpu.memory_space<vmem>>, %arg8: memref<1x128xf32, #tpu.memory_space<vmem>>, %arg9: memref<1x16x128xf32, #tpu.memory_space<vmem>>) attributes {dimension_semantics = [#tpu.dimension_semantics<parallel>], iteration_bounds = array<i64: 2>, scalar_prefetch = 0 : i64, scratch_operands = 0 : i64, tpu.core_type = #tpu.core_type<tc>, window_params = [{transform_indices = @transform_0, window_bounds = array<i64: 1, 16, 32>}, {pipeline_mode = #tpu.pipeline_mode<synchronous>, transform_indices = @transform_1, window_bounds = array<i64: 2, 32, 96>}, {pipeline_mode = #tpu.pipeline_mode<synchronous>, transform_indices = @transform_2, window_bounds = array<i64: 2, 32, 32>}, {pipeline_mode = #tpu.pipeline_mode<synchronous>, transform_indices = @transform_3, window_bounds = array<i64: 2, 32, 128>}, {pipeline_mode = #tpu.pipeline_mode<synchronous>, transform_indices = @transform_4, window_bounds = array<i64: 2, 128, 32>}, {pipeline_mode = #tpu.pipeline_mode<synchronous>, transform_indices = @transform_5, window_bounds = array<i64: 2, 8, 128>}, {pipeline_mode = #tpu.pipeline_mode<synchronous>, transform_indices = @transform_6, window_bounds = array<i64: 32, 128>}, {pipeline_mode = #tpu.pipeline_mode<synchronous>, transform_indices = @transform_7, window_bounds = array<i64: 1, 128>}, {transform_indices = @transform_8, window_bounds = array<i64: 1, 16, 128>}]} {
    %c0 = arith.constant 0 : index
    %c0_0 = arith.constant 0 : index
    %c0_1 = arith.constant 0 : index
    %0 = vector.load %arg1[%c0, %c0_0, %c0_1] : memref<1x16x32xf32, #tpu.memory_space<vmem>>, vector<1x16x32xf32>
    %1 = vector.shape_cast %0 : vector<1x16x32xf32> to vector<16x32xf32>
    %2 = tpu.iota {dimensions = array<i32: 0>} : vector<16x16xi32>
    %3 = tpu.iota {dimensions = array<i32: 1>} : vector<16x16xi32>
    %4 = arith.cmpi sle, %3, %2 : vector<16x16xi32>
    %cst = arith.constant 0.000000e+00 : f32
    %cst_2 = arith.constant -1.000000e+30 : f32
    %5 = vector.broadcast %cst : f32 to vector<16x16xf32>
    %6 = vector.broadcast %cst_2 : f32 to vector<16x16xf32>
    %7 = arith.select %4, %5, %6 : vector<16x16xi1>, vector<16x16xf32>
    %c0_3 = arith.constant 0 : index
    %c0_4 = arith.constant 0 : index
    %c0_5 = arith.constant 0 : index
    %8 = vector.load %arg6[%c0_3, %c0_4, %c0_5] : memref<2x8x128xf32, #tpu.memory_space<vmem>>, vector<1x8x128xf32>
    %9 = vector.shape_cast %8 : vector<1x8x128xf32> to vector<8x128xf32>
    %10 = vector.extract_strided_slice %9 {offsets = [0, 0], sizes = [1, 96], strides = [1, 1]} : vector<8x128xf32> to vector<1x96xf32>
    %11 = vector.shape_cast %10 : vector<1x96xf32> to vector<96xf32>
    %12 = vector.extract_strided_slice %9 {offsets = [1, 0], sizes = [1, 32], strides = [1, 1]} : vector<8x128xf32> to vector<1x32xf32>
    %13 = vector.shape_cast %12 : vector<1x32xf32> to vector<32xf32>
    %14 = vector.extract_strided_slice %9 {offsets = [2, 0], sizes = [1, 128], strides = [1, 1]} : vector<8x128xf32> to vector<1x128xf32>
    %15 = vector.shape_cast %14 : vector<1x128xf32> to vector<128xf32>
    %16 = vector.extract_strided_slice %9 {offsets = [3, 0], sizes = [1, 32], strides = [1, 1]} : vector<8x128xf32> to vector<1x32xf32>
    %17 = vector.shape_cast %16 : vector<1x32xf32> to vector<32xf32>
    %cst_6 = arith.constant dense<0.000000e+00> : vector<16xf32>
    %18 = vector.multi_reduction <add>, %1, %cst_6 [1] : vector<16x32xf32> to vector<16xf32>
    %19 = vector.shape_cast %18 : vector<16xf32> to vector<16x1xf32>
    %cst_7 = arith.constant 3.200000e+01 : f32
    %20 = vector.broadcast %cst_7 : f32 to vector<16x1xf32>
    %21 = arith.divf %19, %20 : vector<16x1xf32>
    %22 = vector.broadcast %21 : vector<16x1xf32> to vector<16x32xf32>
    %23 = arith.subf %1, %22 : vector<16x32xf32>
    %24 = arith.mulf %23, %23 : vector<16x32xf32>
    %cst_8 = arith.constant dense<0.000000e+00> : vector<16xf32>
    %25 = vector.multi_reduction <add>, %24, %cst_8 [1] : vector<16x32xf32> to vector<16xf32>
    %26 = vector.shape_cast %25 : vector<16xf32> to vector<16x1xf32>
    %cst_9 = arith.constant 3.200000e+01 : f32
    %27 = vector.broadcast %cst_9 : f32 to vector<16x1xf32>
    %28 = arith.divf %26, %27 : vector<16x1xf32>
    %29 = vector.broadcast %21 : vector<16x1xf32> to vector<16x32xf32>
    %30 = arith.subf %1, %29 : vector<16x32xf32>
    %cst_10 = arith.constant 9.99999974E-6 : f32
    %31 = vector.broadcast %cst_10 : f32 to vector<16x1xf32>
    %32 = arith.addf %28, %31 : vector<16x1xf32>
    %33 = math.rsqrt %32 : vector<16x1xf32>
    %34 = vector.broadcast %33 : vector<16x1xf32> to vector<16x32xf32>
    %35 = arith.mulf %30, %34 : vector<16x32xf32>
    %36 = arith.truncf %35 : vector<16x32xf32> to vector<16x32xbf16>
    %c0_11 = arith.constant 0 : index
    %c0_12 = arith.constant 0 : index
    %c0_13 = arith.constant 0 : index
    %37 = vector.load %arg2[%c0_11, %c0_12, %c0_13] : memref<2x32x96xbf16, #tpu.memory_space<vmem>>, vector<1x32x96xbf16>
    %38 = vector.shape_cast %37 : vector<1x32x96xbf16> to vector<32x96xbf16>
    %cst_14 = arith.constant dense<0.000000e+00> : vector<16x96xf32>
    %39 = tpu.matmul %36, %38, %cst_14 {dimension_numbers = #tpu.dot_dimension_numbers<[1], [0], [0], [1], [0, 0, 1, 1], [], []>} : vector<16x32xbf16>, vector<32x96xbf16>, vector<16x96xf32> -> vector<16x96xf32>
    %40 = vector.shape_cast %11 : vector<96xf32> to vector<1x96xf32>
    %41 = vector.broadcast %40 : vector<1x96xf32> to vector<16x96xf32>
    %42 = arith.addf %39, %41 : vector<16x96xf32>
    %43 = vector.extract_strided_slice %42 {offsets = [0, 0], sizes = [16, 8], strides = [1, 1]} : vector<16x96xf32> to vector<16x8xf32>
    %44 = arith.truncf %43 : vector<16x8xf32> to vector<16x8xbf16>
    %45 = vector.extract_strided_slice %42 {offsets = [0, 32], sizes = [16, 8], strides = [1, 1]} : vector<16x96xf32> to vector<16x8xf32>
    %46 = arith.truncf %45 : vector<16x8xf32> to vector<16x8xbf16>
    %47 = vector.extract_strided_slice %42 {offsets = [0, 64], sizes = [16, 8], strides = [1, 1]} : vector<16x96xf32> to vector<16x8xf32>
    %48 = arith.truncf %47 : vector<16x8xf32> to vector<16x8xbf16>
    %cst_15 = arith.constant dense<0.000000e+00> : vector<16x16xf32>
    %49 = tpu.matmul %44, %46, %cst_15 {dimension_numbers = #tpu.dot_dimension_numbers<[1], [1], [0], [0], [0, 0, 1, 0], [], []>} : vector<16x8xbf16>, vector<16x8xbf16>, vector<16x16xf32> -> vector<16x16xf32>
    %cst_16 = arith.constant 0.353553385 : f32
    %50 = vector.broadcast %cst_16 : f32 to vector<16x16xf32>
    %51 = arith.mulf %49, %50 : vector<16x16xf32>
    %52 = arith.addf %51, %7 : vector<16x16xf32>
    %cst_17 = arith.constant dense<0xFF800000> : vector<16xf32>
    %53 = vector.multi_reduction <maximumf>, %52, %cst_17 [1] : vector<16x16xf32> to vector<16xf32>
    %54 = vector.shape_cast %53 : vector<16xf32> to vector<16x1xf32>
    %55 = vector.broadcast %54 : vector<16x1xf32> to vector<16x16xf32>
    %56 = arith.subf %52, %55 : vector<16x16xf32>
    %57 = math.exp %56 : vector<16x16xf32>
    %cst_18 = arith.constant dense<0.000000e+00> : vector<16xf32>
    %58 = vector.multi_reduction <add>, %57, %cst_18 [1] : vector<16x16xf32> to vector<16xf32>
    %59 = vector.shape_cast %58 : vector<16xf32> to vector<16x1xf32>
    %60 = tpu.reciprocal %59 {approx = true} : vector<16x1xf32> -> vector<16x1xf32>
    %61 = vector.broadcast %60 : vector<16x1xf32> to vector<16x16xf32>
    %62 = arith.mulf %57, %61 : vector<16x16xf32>
    %63 = arith.truncf %62 : vector<16x16xf32> to vector<16x16xbf16>
    %cst_19 = arith.constant dense<0.000000e+00> : vector<16x8xf32>
    %64 = tpu.matmul %63, %48, %cst_19 {dimension_numbers = #tpu.dot_dimension_numbers<[1], [0], [0], [1], [0, 0, 1, 1], [], []>} : vector<16x16xbf16>, vector<16x8xbf16>, vector<16x8xf32> -> vector<16x8xf32>
    %65 = vector.extract_strided_slice %42 {offsets = [0, 8], sizes = [16, 8], strides = [1, 1]} : vector<16x96xf32> to vector<16x8xf32>
    %66 = arith.truncf %65 : vector<16x8xf32> to vector<16x8xbf16>
    %67 = vector.extract_strided_slice %42 {offsets = [0, 40], sizes = [16, 8], strides = [1, 1]} : vector<16x96xf32> to vector<16x8xf32>
    %68 = arith.truncf %67 : vector<16x8xf32> to vector<16x8xbf16>
    %69 = vector.extract_strided_slice %42 {offsets = [0, 72], sizes = [16, 8], strides = [1, 1]} : vector<16x96xf32> to vector<16x8xf32>
    %70 = arith.truncf %69 : vector<16x8xf32> to vector<16x8xbf16>
    %cst_20 = arith.constant dense<0.000000e+00> : vector<16x16xf32>
    %71 = tpu.matmul %66, %68, %cst_20 {dimension_numbers = #tpu.dot_dimension_numbers<[1], [1], [0], [0], [0, 0, 1, 0], [], []>} : vector<16x8xbf16>, vector<16x8xbf16>, vector<16x16xf32> -> vector<16x16xf32>
    %cst_21 = arith.constant 0.353553385 : f32
    %72 = vector.broadcast %cst_21 : f32 to vector<16x16xf32>
    %73 = arith.mulf %71, %72 : vector<16x16xf32>
    %74 = arith.addf %73, %7 : vector<16x16xf32>
    %cst_22 = arith.constant dense<0xFF800000> : vector<16xf32>
    %75 = vector.multi_reduction <maximumf>, %74, %cst_22 [1] : vector<16x16xf32> to vector<16xf32>
    %76 = vector.shape_cast %75 : vector<16xf32> to vector<16x1xf32>
    %77 = vector.broadcast %76 : vector<16x1xf32> to vector<16x16xf32>
    %78 = arith.subf %74, %77 : vector<16x16xf32>
    %79 = math.exp %78 : vector<16x16xf32>
    %cst_23 = arith.constant dense<0.000000e+00> : vector<16xf32>
    %80 = vector.multi_reduction <add>, %79, %cst_23 [1] : vector<16x16xf32> to vector<16xf32>
    %81 = vector.shape_cast %80 : vector<16xf32> to vector<16x1xf32>
    %82 = tpu.reciprocal %81 {approx = true} : vector<16x1xf32> -> vector<16x1xf32>
    %83 = vector.broadcast %82 : vector<16x1xf32> to vector<16x16xf32>
    %84 = arith.mulf %79, %83 : vector<16x16xf32>
    %85 = arith.truncf %84 : vector<16x16xf32> to vector<16x16xbf16>
    %cst_24 = arith.constant dense<0.000000e+00> : vector<16x8xf32>
    %86 = tpu.matmul %85, %70, %cst_24 {dimension_numbers = #tpu.dot_dimension_numbers<[1], [0], [0], [1], [0, 0, 1, 1], [], []>} : vector<16x16xbf16>, vector<16x8xbf16>, vector<16x8xf32> -> vector<16x8xf32>
    %87 = vector.extract_strided_slice %42 {offsets = [0, 16], sizes = [16, 8], strides = [1, 1]} : vector<16x96xf32> to vector<16x8xf32>
    %88 = arith.truncf %87 : vector<16x8xf32> to vector<16x8xbf16>
    %89 = vector.extract_strided_slice %42 {offsets = [0, 48], sizes = [16, 8], strides = [1, 1]} : vector<16x96xf32> to vector<16x8xf32>
    %90 = arith.truncf %89 : vector<16x8xf32> to vector<16x8xbf16>
    %91 = vector.extract_strided_slice %42 {offsets = [0, 80], sizes = [16, 8], strides = [1, 1]} : vector<16x96xf32> to vector<16x8xf32>
    %92 = arith.truncf %91 : vector<16x8xf32> to vector<16x8xbf16>
    %cst_25 = arith.constant dense<0.000000e+00> : vector<16x16xf32>
    %93 = tpu.matmul %88, %90, %cst_25 {dimension_numbers = #tpu.dot_dimension_numbers<[1], [1], [0], [0], [0, 0, 1, 0], [], []>} : vector<16x8xbf16>, vector<16x8xbf16>, vector<16x16xf32> -> vector<16x16xf32>
    %cst_26 = arith.constant 0.353553385 : f32
    %94 = vector.broadcast %cst_26 : f32 to vector<16x16xf32>
    %95 = arith.mulf %93, %94 : vector<16x16xf32>
    %96 = arith.addf %95, %7 : vector<16x16xf32>
    %cst_27 = arith.constant dense<0xFF800000> : vector<16xf32>
    %97 = vector.multi_reduction <maximumf>, %96, %cst_27 [1] : vector<16x16xf32> to vector<16xf32>
    %98 = vector.shape_cast %97 : vector<16xf32> to vector<16x1xf32>
    %99 = vector.broadcast %98 : vector<16x1xf32> to vector<16x16xf32>
    %100 = arith.subf %96, %99 : vector<16x16xf32>
    %101 = math.exp %100 : vector<16x16xf32>
    %cst_28 = arith.constant dense<0.000000e+00> : vector<16xf32>
    %102 = vector.multi_reduction <add>, %101, %cst_28 [1] : vector<16x16xf32> to vector<16xf32>
    %103 = vector.shape_cast %102 : vector<16xf32> to vector<16x1xf32>
    %104 = tpu.reciprocal %103 {approx = true} : vector<16x1xf32> -> vector<16x1xf32>
    %105 = vector.broadcast %104 : vector<16x1xf32> to vector<16x16xf32>
    %106 = arith.mulf %101, %105 : vector<16x16xf32>
    %107 = arith.truncf %106 : vector<16x16xf32> to vector<16x16xbf16>
    %cst_29 = arith.constant dense<0.000000e+00> : vector<16x8xf32>
    %108 = tpu.matmul %107, %92, %cst_29 {dimension_numbers = #tpu.dot_dimension_numbers<[1], [0], [0], [1], [0, 0, 1, 1], [], []>} : vector<16x16xbf16>, vector<16x8xbf16>, vector<16x8xf32> -> vector<16x8xf32>
    %109 = vector.extract_strided_slice %42 {offsets = [0, 24], sizes = [16, 8], strides = [1, 1]} : vector<16x96xf32> to vector<16x8xf32>
    %110 = arith.truncf %109 : vector<16x8xf32> to vector<16x8xbf16>
    %111 = vector.extract_strided_slice %42 {offsets = [0, 56], sizes = [16, 8], strides = [1, 1]} : vector<16x96xf32> to vector<16x8xf32>
    %112 = arith.truncf %111 : vector<16x8xf32> to vector<16x8xbf16>
    %113 = vector.extract_strided_slice %42 {offsets = [0, 88], sizes = [16, 8], strides = [1, 1]} : vector<16x96xf32> to vector<16x8xf32>
    %114 = arith.truncf %113 : vector<16x8xf32> to vector<16x8xbf16>
    %cst_30 = arith.constant dense<0.000000e+00> : vector<16x16xf32>
    %115 = tpu.matmul %110, %112, %cst_30 {dimension_numbers = #tpu.dot_dimension_numbers<[1], [1], [0], [0], [0, 0, 1, 0], [], []>} : vector<16x8xbf16>, vector<16x8xbf16>, vector<16x16xf32> -> vector<16x16xf32>
    %cst_31 = arith.constant 0.353553385 : f32
    %116 = vector.broadcast %cst_31 : f32 to vector<16x16xf32>
    %117 = arith.mulf %115, %116 : vector<16x16xf32>
    %118 = arith.addf %117, %7 : vector<16x16xf32>
    %cst_32 = arith.constant dense<0xFF800000> : vector<16xf32>
    %119 = vector.multi_reduction <maximumf>, %118, %cst_32 [1] : vector<16x16xf32> to vector<16xf32>
    %120 = vector.shape_cast %119 : vector<16xf32> to vector<16x1xf32>
    %121 = vector.broadcast %120 : vector<16x1xf32> to vector<16x16xf32>
    %122 = arith.subf %118, %121 : vector<16x16xf32>
    %123 = math.exp %122 : vector<16x16xf32>
    %cst_33 = arith.constant dense<0.000000e+00> : vector<16xf32>
    %124 = vector.multi_reduction <add>, %123, %cst_33 [1] : vector<16x16xf32> to vector<16xf32>
    %125 = vector.shape_cast %124 : vector<16xf32> to vector<16x1xf32>
    %126 = tpu.reciprocal %125 {approx = true} : vector<16x1xf32> -> vector<16x1xf32>
    %127 = vector.broadcast %126 : vector<16x1xf32> to vector<16x16xf32>
    %128 = arith.mulf %123, %127 : vector<16x16xf32>
    %129 = arith.truncf %128 : vector<16x16xf32> to vector<16x16xbf16>
    %cst_34 = arith.constant dense<0.000000e+00> : vector<16x8xf32>
    %130 = tpu.matmul %129, %114, %cst_34 {dimension_numbers = #tpu.dot_dimension_numbers<[1], [0], [0], [1], [0, 0, 1, 1], [], []>} : vector<16x16xbf16>, vector<16x8xbf16>, vector<16x8xf32> -> vector<16x8xf32>
    %131 = tpu.concatenate %64, %86, %108, %130 in 1 : vector<16x8xf32>, vector<16x8xf32>, vector<16x8xf32>, vector<16x8xf32> -> vector<16x32xf32>
    %132 = arith.truncf %131 : vector<16x32xf32> to vector<16x32xbf16>
    %c0_35 = arith.constant 0 : index
    %c0_36 = arith.constant 0 : index
    %c0_37 = arith.constant 0 : index
    %133 = vector.load %arg3[%c0_35, %c0_36, %c0_37] : memref<2x32x32xbf16, #tpu.memory_space<vmem>>, vector<1x32x32xbf16>
    %134 = vector.shape_cast %133 : vector<1x32x32xbf16> to vector<32x32xbf16>
    %cst_38 = arith.constant dense<0.000000e+00> : vector<16x32xf32>
    %135 = tpu.matmul %132, %134, %cst_38 {dimension_numbers = #tpu.dot_dimension_numbers<[1], [0], [0], [1], [0, 0, 1, 1], [], []>} : vector<16x32xbf16>, vector<32x32xbf16>, vector<16x32xf32> -> vector<16x32xf32>
    %136 = vector.shape_cast %13 : vector<32xf32> to vector<1x32xf32>
    %137 = vector.broadcast %136 : vector<1x32xf32> to vector<16x32xf32>
    %138 = arith.addf %135, %137 : vector<16x32xf32>
    %139 = arith.addf %1, %138 : vector<16x32xf32>
    %cst_39 = arith.constant dense<0.000000e+00> : vector<16xf32>
    %140 = vector.multi_reduction <add>, %139, %cst_39 [1] : vector<16x32xf32> to vector<16xf32>
    %141 = vector.shape_cast %140 : vector<16xf32> to vector<16x1xf32>
    %cst_40 = arith.constant 3.200000e+01 : f32
    %142 = vector.broadcast %cst_40 : f32 to vector<16x1xf32>
    %143 = arith.divf %141, %142 : vector<16x1xf32>
    %144 = vector.broadcast %143 : vector<16x1xf32> to vector<16x32xf32>
    %145 = arith.subf %139, %144 : vector<16x32xf32>
    %146 = arith.mulf %145, %145 : vector<16x32xf32>
    %cst_41 = arith.constant dense<0.000000e+00> : vector<16xf32>
    %147 = vector.multi_reduction <add>, %146, %cst_41 [1] : vector<16x32xf32> to vector<16xf32>
    %148 = vector.shape_cast %147 : vector<16xf32> to vector<16x1xf32>
    %cst_42 = arith.constant 3.200000e+01 : f32
    %149 = vector.broadcast %cst_42 : f32 to vector<16x1xf32>
    %150 = arith.divf %148, %149 : vector<16x1xf32>
    %151 = vector.broadcast %143 : vector<16x1xf32> to vector<16x32xf32>
    %152 = arith.subf %139, %151 : vector<16x32xf32>
    %cst_43 = arith.constant 9.99999974E-6 : f32
    %153 = vector.broadcast %cst_43 : f32 to vector<16x1xf32>
    %154 = arith.addf %150, %153 : vector<16x1xf32>
    %155 = math.rsqrt %154 : vector<16x1xf32>
    %156 = vector.broadcast %155 : vector<16x1xf32> to vector<16x32xf32>
    %157 = arith.mulf %152, %156 : vector<16x32xf32>
    %158 = arith.truncf %157 : vector<16x32xf32> to vector<16x32xbf16>
    %c0_44 = arith.constant 0 : index
    %c0_45 = arith.constant 0 : index
    %c0_46 = arith.constant 0 : index
    %159 = vector.load %arg4[%c0_44, %c0_45, %c0_46] : memref<2x32x128xbf16, #tpu.memory_space<vmem>>, vector<1x32x128xbf16>
    %160 = vector.shape_cast %159 : vector<1x32x128xbf16> to vector<32x128xbf16>
    %cst_47 = arith.constant dense<0.000000e+00> : vector<16x128xf32>
    %161 = tpu.matmul %158, %160, %cst_47 {dimension_numbers = #tpu.dot_dimension_numbers<[1], [0], [0], [1], [0, 0, 1, 1], [], []>} : vector<16x32xbf16>, vector<32x128xbf16>, vector<16x128xf32> -> vector<16x128xf32>
    %162 = vector.shape_cast %15 : vector<128xf32> to vector<1x128xf32>
    %163 = vector.broadcast %162 : vector<1x128xf32> to vector<16x128xf32>
    %164 = arith.addf %161, %163 : vector<16x128xf32>
    %cst_48 = arith.constant 1.702000e+00 : f32
    %165 = vector.broadcast %cst_48 : f32 to vector<16x128xf32>
    %166 = arith.mulf %165, %164 : vector<16x128xf32>
    %167 = arith.negf %166 : vector<16x128xf32>
    %168 = math.exp %167 : vector<16x128xf32>
    %cst_49 = arith.constant 1.000000e+00 : f32
    %169 = vector.broadcast %cst_49 : f32 to vector<16x128xf32>
    %170 = arith.addf %169, %168 : vector<16x128xf32>
    %171 = arith.divf %169, %170 : vector<16x128xf32>
    %172 = arith.mulf %164, %171 : vector<16x128xf32>
    %173 = arith.truncf %172 : vector<16x128xf32> to vector<16x128xbf16>
    %c0_50 = arith.constant 0 : index
    %c0_51 = arith.constant 0 : index
    %c0_52 = arith.constant 0 : index
    %174 = vector.load %arg5[%c0_50, %c0_51, %c0_52] : memref<2x128x32xbf16, #tpu.memory_space<vmem>>, vector<1x128x32xbf16>
    %175 = vector.shape_cast %174 : vector<1x128x32xbf16> to vector<128x32xbf16>
    %cst_53 = arith.constant dense<0.000000e+00> : vector<16x32xf32>
    %176 = tpu.matmul %173, %175, %cst_53 {dimension_numbers = #tpu.dot_dimension_numbers<[1], [0], [0], [1], [0, 0, 1, 1], [], []>} : vector<16x128xbf16>, vector<128x32xbf16>, vector<16x32xf32> -> vector<16x32xf32>
    %177 = vector.shape_cast %17 : vector<32xf32> to vector<1x32xf32>
    %178 = vector.broadcast %177 : vector<1x32xf32> to vector<16x32xf32>
    %179 = arith.addf %176, %178 : vector<16x32xf32>
    %180 = arith.addf %139, %179 : vector<16x32xf32>
    %c1 = arith.constant 1 : index
    %c0_54 = arith.constant 0 : index
    %c0_55 = arith.constant 0 : index
    %181 = vector.load %arg6[%c1, %c0_54, %c0_55] : memref<2x8x128xf32, #tpu.memory_space<vmem>>, vector<1x8x128xf32>
    %182 = vector.shape_cast %181 : vector<1x8x128xf32> to vector<8x128xf32>
    %183 = vector.extract_strided_slice %182 {offsets = [0, 0], sizes = [1, 96], strides = [1, 1]} : vector<8x128xf32> to vector<1x96xf32>
    %184 = vector.shape_cast %183 : vector<1x96xf32> to vector<96xf32>
    %185 = vector.extract_strided_slice %182 {offsets = [1, 0], sizes = [1, 32], strides = [1, 1]} : vector<8x128xf32> to vector<1x32xf32>
    %186 = vector.shape_cast %185 : vector<1x32xf32> to vector<32xf32>
    %187 = vector.extract_strided_slice %182 {offsets = [2, 0], sizes = [1, 128], strides = [1, 1]} : vector<8x128xf32> to vector<1x128xf32>
    %188 = vector.shape_cast %187 : vector<1x128xf32> to vector<128xf32>
    %189 = vector.extract_strided_slice %182 {offsets = [3, 0], sizes = [1, 32], strides = [1, 1]} : vector<8x128xf32> to vector<1x32xf32>
    %190 = vector.shape_cast %189 : vector<1x32xf32> to vector<32xf32>
    %cst_56 = arith.constant dense<0.000000e+00> : vector<16xf32>
    %191 = vector.multi_reduction <add>, %180, %cst_56 [1] : vector<16x32xf32> to vector<16xf32>
    %192 = vector.shape_cast %191 : vector<16xf32> to vector<16x1xf32>
    %cst_57 = arith.constant 3.200000e+01 : f32
    %193 = vector.broadcast %cst_57 : f32 to vector<16x1xf32>
    %194 = arith.divf %192, %193 : vector<16x1xf32>
    %195 = vector.broadcast %194 : vector<16x1xf32> to vector<16x32xf32>
    %196 = arith.subf %180, %195 : vector<16x32xf32>
    %197 = arith.mulf %196, %196 : vector<16x32xf32>
    %cst_58 = arith.constant dense<0.000000e+00> : vector<16xf32>
    %198 = vector.multi_reduction <add>, %197, %cst_58 [1] : vector<16x32xf32> to vector<16xf32>
    %199 = vector.shape_cast %198 : vector<16xf32> to vector<16x1xf32>
    %cst_59 = arith.constant 3.200000e+01 : f32
    %200 = vector.broadcast %cst_59 : f32 to vector<16x1xf32>
    %201 = arith.divf %199, %200 : vector<16x1xf32>
    %202 = vector.broadcast %194 : vector<16x1xf32> to vector<16x32xf32>
    %203 = arith.subf %180, %202 : vector<16x32xf32>
    %cst_60 = arith.constant 9.99999974E-6 : f32
    %204 = vector.broadcast %cst_60 : f32 to vector<16x1xf32>
    %205 = arith.addf %201, %204 : vector<16x1xf32>
    %206 = math.rsqrt %205 : vector<16x1xf32>
    %207 = vector.broadcast %206 : vector<16x1xf32> to vector<16x32xf32>
    %208 = arith.mulf %203, %207 : vector<16x32xf32>
    %209 = arith.truncf %208 : vector<16x32xf32> to vector<16x32xbf16>
    %c1_61 = arith.constant 1 : index
    %c0_62 = arith.constant 0 : index
    %c0_63 = arith.constant 0 : index
    %210 = vector.load %arg2[%c1_61, %c0_62, %c0_63] : memref<2x32x96xbf16, #tpu.memory_space<vmem>>, vector<1x32x96xbf16>
    %211 = vector.shape_cast %210 : vector<1x32x96xbf16> to vector<32x96xbf16>
    %cst_64 = arith.constant dense<0.000000e+00> : vector<16x96xf32>
    %212 = tpu.matmul %209, %211, %cst_64 {dimension_numbers = #tpu.dot_dimension_numbers<[1], [0], [0], [1], [0, 0, 1, 1], [], []>} : vector<16x32xbf16>, vector<32x96xbf16>, vector<16x96xf32> -> vector<16x96xf32>
    %213 = vector.shape_cast %184 : vector<96xf32> to vector<1x96xf32>
    %214 = vector.broadcast %213 : vector<1x96xf32> to vector<16x96xf32>
    %215 = arith.addf %212, %214 : vector<16x96xf32>
    %216 = vector.extract_strided_slice %215 {offsets = [0, 0], sizes = [16, 8], strides = [1, 1]} : vector<16x96xf32> to vector<16x8xf32>
    %217 = arith.truncf %216 : vector<16x8xf32> to vector<16x8xbf16>
    %218 = vector.extract_strided_slice %215 {offsets = [0, 32], sizes = [16, 8], strides = [1, 1]} : vector<16x96xf32> to vector<16x8xf32>
    %219 = arith.truncf %218 : vector<16x8xf32> to vector<16x8xbf16>
    %220 = vector.extract_strided_slice %215 {offsets = [0, 64], sizes = [16, 8], strides = [1, 1]} : vector<16x96xf32> to vector<16x8xf32>
    %221 = arith.truncf %220 : vector<16x8xf32> to vector<16x8xbf16>
    %cst_65 = arith.constant dense<0.000000e+00> : vector<16x16xf32>
    %222 = tpu.matmul %217, %219, %cst_65 {dimension_numbers = #tpu.dot_dimension_numbers<[1], [1], [0], [0], [0, 0, 1, 0], [], []>} : vector<16x8xbf16>, vector<16x8xbf16>, vector<16x16xf32> -> vector<16x16xf32>
    %cst_66 = arith.constant 0.353553385 : f32
    %223 = vector.broadcast %cst_66 : f32 to vector<16x16xf32>
    %224 = arith.mulf %222, %223 : vector<16x16xf32>
    %225 = arith.addf %224, %7 : vector<16x16xf32>
    %cst_67 = arith.constant dense<0xFF800000> : vector<16xf32>
    %226 = vector.multi_reduction <maximumf>, %225, %cst_67 [1] : vector<16x16xf32> to vector<16xf32>
    %227 = vector.shape_cast %226 : vector<16xf32> to vector<16x1xf32>
    %228 = vector.broadcast %227 : vector<16x1xf32> to vector<16x16xf32>
    %229 = arith.subf %225, %228 : vector<16x16xf32>
    %230 = math.exp %229 : vector<16x16xf32>
    %cst_68 = arith.constant dense<0.000000e+00> : vector<16xf32>
    %231 = vector.multi_reduction <add>, %230, %cst_68 [1] : vector<16x16xf32> to vector<16xf32>
    %232 = vector.shape_cast %231 : vector<16xf32> to vector<16x1xf32>
    %233 = tpu.reciprocal %232 {approx = true} : vector<16x1xf32> -> vector<16x1xf32>
    %234 = vector.broadcast %233 : vector<16x1xf32> to vector<16x16xf32>
    %235 = arith.mulf %230, %234 : vector<16x16xf32>
    %236 = arith.truncf %235 : vector<16x16xf32> to vector<16x16xbf16>
    %cst_69 = arith.constant dense<0.000000e+00> : vector<16x8xf32>
    %237 = tpu.matmul %236, %221, %cst_69 {dimension_numbers = #tpu.dot_dimension_numbers<[1], [0], [0], [1], [0, 0, 1, 1], [], []>} : vector<16x16xbf16>, vector<16x8xbf16>, vector<16x8xf32> -> vector<16x8xf32>
    %238 = vector.extract_strided_slice %215 {offsets = [0, 8], sizes = [16, 8], strides = [1, 1]} : vector<16x96xf32> to vector<16x8xf32>
    %239 = arith.truncf %238 : vector<16x8xf32> to vector<16x8xbf16>
    %240 = vector.extract_strided_slice %215 {offsets = [0, 40], sizes = [16, 8], strides = [1, 1]} : vector<16x96xf32> to vector<16x8xf32>
    %241 = arith.truncf %240 : vector<16x8xf32> to vector<16x8xbf16>
    %242 = vector.extract_strided_slice %215 {offsets = [0, 72], sizes = [16, 8], strides = [1, 1]} : vector<16x96xf32> to vector<16x8xf32>
    %243 = arith.truncf %242 : vector<16x8xf32> to vector<16x8xbf16>
    %cst_70 = arith.constant dense<0.000000e+00> : vector<16x16xf32>
    %244 = tpu.matmul %239, %241, %cst_70 {dimension_numbers = #tpu.dot_dimension_numbers<[1], [1], [0], [0], [0, 0, 1, 0], [], []>} : vector<16x8xbf16>, vector<16x8xbf16>, vector<16x16xf32> -> vector<16x16xf32>
    %cst_71 = arith.constant 0.353553385 : f32
    %245 = vector.broadcast %cst_71 : f32 to vector<16x16xf32>
    %246 = arith.mulf %244, %245 : vector<16x16xf32>
    %247 = arith.addf %246, %7 : vector<16x16xf32>
    %cst_72 = arith.constant dense<0xFF800000> : vector<16xf32>
    %248 = vector.multi_reduction <maximumf>, %247, %cst_72 [1] : vector<16x16xf32> to vector<16xf32>
    %249 = vector.shape_cast %248 : vector<16xf32> to vector<16x1xf32>
    %250 = vector.broadcast %249 : vector<16x1xf32> to vector<16x16xf32>
    %251 = arith.subf %247, %250 : vector<16x16xf32>
    %252 = math.exp %251 : vector<16x16xf32>
    %cst_73 = arith.constant dense<0.000000e+00> : vector<16xf32>
    %253 = vector.multi_reduction <add>, %252, %cst_73 [1] : vector<16x16xf32> to vector<16xf32>
    %254 = vector.shape_cast %253 : vector<16xf32> to vector<16x1xf32>
    %255 = tpu.reciprocal %254 {approx = true} : vector<16x1xf32> -> vector<16x1xf32>
    %256 = vector.broadcast %255 : vector<16x1xf32> to vector<16x16xf32>
    %257 = arith.mulf %252, %256 : vector<16x16xf32>
    %258 = arith.truncf %257 : vector<16x16xf32> to vector<16x16xbf16>
    %cst_74 = arith.constant dense<0.000000e+00> : vector<16x8xf32>
    %259 = tpu.matmul %258, %243, %cst_74 {dimension_numbers = #tpu.dot_dimension_numbers<[1], [0], [0], [1], [0, 0, 1, 1], [], []>} : vector<16x16xbf16>, vector<16x8xbf16>, vector<16x8xf32> -> vector<16x8xf32>
    %260 = vector.extract_strided_slice %215 {offsets = [0, 16], sizes = [16, 8], strides = [1, 1]} : vector<16x96xf32> to vector<16x8xf32>
    %261 = arith.truncf %260 : vector<16x8xf32> to vector<16x8xbf16>
    %262 = vector.extract_strided_slice %215 {offsets = [0, 48], sizes = [16, 8], strides = [1, 1]} : vector<16x96xf32> to vector<16x8xf32>
    %263 = arith.truncf %262 : vector<16x8xf32> to vector<16x8xbf16>
    %264 = vector.extract_strided_slice %215 {offsets = [0, 80], sizes = [16, 8], strides = [1, 1]} : vector<16x96xf32> to vector<16x8xf32>
    %265 = arith.truncf %264 : vector<16x8xf32> to vector<16x8xbf16>
    %cst_75 = arith.constant dense<0.000000e+00> : vector<16x16xf32>
    %266 = tpu.matmul %261, %263, %cst_75 {dimension_numbers = #tpu.dot_dimension_numbers<[1], [1], [0], [0], [0, 0, 1, 0], [], []>} : vector<16x8xbf16>, vector<16x8xbf16>, vector<16x16xf32> -> vector<16x16xf32>
    %cst_76 = arith.constant 0.353553385 : f32
    %267 = vector.broadcast %cst_76 : f32 to vector<16x16xf32>
    %268 = arith.mulf %266, %267 : vector<16x16xf32>
    %269 = arith.addf %268, %7 : vector<16x16xf32>
    %cst_77 = arith.constant dense<0xFF800000> : vector<16xf32>
    %270 = vector.multi_reduction <maximumf>, %269, %cst_77 [1] : vector<16x16xf32> to vector<16xf32>
    %271 = vector.shape_cast %270 : vector<16xf32> to vector<16x1xf32>
    %272 = vector.broadcast %271 : vector<16x1xf32> to vector<16x16xf32>
    %273 = arith.subf %269, %272 : vector<16x16xf32>
    %274 = math.exp %273 : vector<16x16xf32>
    %cst_78 = arith.constant dense<0.000000e+00> : vector<16xf32>
    %275 = vector.multi_reduction <add>, %274, %cst_78 [1] : vector<16x16xf32> to vector<16xf32>
    %276 = vector.shape_cast %275 : vector<16xf32> to vector<16x1xf32>
    %277 = tpu.reciprocal %276 {approx = true} : vector<16x1xf32> -> vector<16x1xf32>
    %278 = vector.broadcast %277 : vector<16x1xf32> to vector<16x16xf32>
    %279 = arith.mulf %274, %278 : vector<16x16xf32>
    %280 = arith.truncf %279 : vector<16x16xf32> to vector<16x16xbf16>
    %cst_79 = arith.constant dense<0.000000e+00> : vector<16x8xf32>
    %281 = tpu.matmul %280, %265, %cst_79 {dimension_numbers = #tpu.dot_dimension_numbers<[1], [0], [0], [1], [0, 0, 1, 1], [], []>} : vector<16x16xbf16>, vector<16x8xbf16>, vector<16x8xf32> -> vector<16x8xf32>
    %282 = vector.extract_strided_slice %215 {offsets = [0, 24], sizes = [16, 8], strides = [1, 1]} : vector<16x96xf32> to vector<16x8xf32>
    %283 = arith.truncf %282 : vector<16x8xf32> to vector<16x8xbf16>
    %284 = vector.extract_strided_slice %215 {offsets = [0, 56], sizes = [16, 8], strides = [1, 1]} : vector<16x96xf32> to vector<16x8xf32>
    %285 = arith.truncf %284 : vector<16x8xf32> to vector<16x8xbf16>
    %286 = vector.extract_strided_slice %215 {offsets = [0, 88], sizes = [16, 8], strides = [1, 1]} : vector<16x96xf32> to vector<16x8xf32>
    %287 = arith.truncf %286 : vector<16x8xf32> to vector<16x8xbf16>
    %cst_80 = arith.constant dense<0.000000e+00> : vector<16x16xf32>
    %288 = tpu.matmul %283, %285, %cst_80 {dimension_numbers = #tpu.dot_dimension_numbers<[1], [1], [0], [0], [0, 0, 1, 0], [], []>} : vector<16x8xbf16>, vector<16x8xbf16>, vector<16x16xf32> -> vector<16x16xf32>
    %cst_81 = arith.constant 0.353553385 : f32
    %289 = vector.broadcast %cst_81 : f32 to vector<16x16xf32>
    %290 = arith.mulf %288, %289 : vector<16x16xf32>
    %291 = arith.addf %290, %7 : vector<16x16xf32>
    %cst_82 = arith.constant dense<0xFF800000> : vector<16xf32>
    %292 = vector.multi_reduction <maximumf>, %291, %cst_82 [1] : vector<16x16xf32> to vector<16xf32>
    %293 = vector.shape_cast %292 : vector<16xf32> to vector<16x1xf32>
    %294 = vector.broadcast %293 : vector<16x1xf32> to vector<16x16xf32>
    %295 = arith.subf %291, %294 : vector<16x16xf32>
    %296 = math.exp %295 : vector<16x16xf32>
    %cst_83 = arith.constant dense<0.000000e+00> : vector<16xf32>
    %297 = vector.multi_reduction <add>, %296, %cst_83 [1] : vector<16x16xf32> to vector<16xf32>
    %298 = vector.shape_cast %297 : vector<16xf32> to vector<16x1xf32>
    %299 = tpu.reciprocal %298 {approx = true} : vector<16x1xf32> -> vector<16x1xf32>
    %300 = vector.broadcast %299 : vector<16x1xf32> to vector<16x16xf32>
    %301 = arith.mulf %296, %300 : vector<16x16xf32>
    %302 = arith.truncf %301 : vector<16x16xf32> to vector<16x16xbf16>
    %cst_84 = arith.constant dense<0.000000e+00> : vector<16x8xf32>
    %303 = tpu.matmul %302, %287, %cst_84 {dimension_numbers = #tpu.dot_dimension_numbers<[1], [0], [0], [1], [0, 0, 1, 1], [], []>} : vector<16x16xbf16>, vector<16x8xbf16>, vector<16x8xf32> -> vector<16x8xf32>
    %304 = tpu.concatenate %237, %259, %281, %303 in 1 : vector<16x8xf32>, vector<16x8xf32>, vector<16x8xf32>, vector<16x8xf32> -> vector<16x32xf32>
    %305 = arith.truncf %304 : vector<16x32xf32> to vector<16x32xbf16>
    %c1_85 = arith.constant 1 : index
    %c0_86 = arith.constant 0 : index
    %c0_87 = arith.constant 0 : index
    %306 = vector.load %arg3[%c1_85, %c0_86, %c0_87] : memref<2x32x32xbf16, #tpu.memory_space<vmem>>, vector<1x32x32xbf16>
    %307 = vector.shape_cast %306 : vector<1x32x32xbf16> to vector<32x32xbf16>
    %cst_88 = arith.constant dense<0.000000e+00> : vector<16x32xf32>
    %308 = tpu.matmul %305, %307, %cst_88 {dimension_numbers = #tpu.dot_dimension_numbers<[1], [0], [0], [1], [0, 0, 1, 1], [], []>} : vector<16x32xbf16>, vector<32x32xbf16>, vector<16x32xf32> -> vector<16x32xf32>
    %309 = vector.shape_cast %186 : vector<32xf32> to vector<1x32xf32>
    %310 = vector.broadcast %309 : vector<1x32xf32> to vector<16x32xf32>
    %311 = arith.addf %308, %310 : vector<16x32xf32>
    %312 = arith.addf %180, %311 : vector<16x32xf32>
    %cst_89 = arith.constant dense<0.000000e+00> : vector<16xf32>
    %313 = vector.multi_reduction <add>, %312, %cst_89 [1] : vector<16x32xf32> to vector<16xf32>
    %314 = vector.shape_cast %313 : vector<16xf32> to vector<16x1xf32>
    %cst_90 = arith.constant 3.200000e+01 : f32
    %315 = vector.broadcast %cst_90 : f32 to vector<16x1xf32>
    %316 = arith.divf %314, %315 : vector<16x1xf32>
    %317 = vector.broadcast %316 : vector<16x1xf32> to vector<16x32xf32>
    %318 = arith.subf %312, %317 : vector<16x32xf32>
    %319 = arith.mulf %318, %318 : vector<16x32xf32>
    %cst_91 = arith.constant dense<0.000000e+00> : vector<16xf32>
    %320 = vector.multi_reduction <add>, %319, %cst_91 [1] : vector<16x32xf32> to vector<16xf32>
    %321 = vector.shape_cast %320 : vector<16xf32> to vector<16x1xf32>
    %cst_92 = arith.constant 3.200000e+01 : f32
    %322 = vector.broadcast %cst_92 : f32 to vector<16x1xf32>
    %323 = arith.divf %321, %322 : vector<16x1xf32>
    %324 = vector.broadcast %316 : vector<16x1xf32> to vector<16x32xf32>
    %325 = arith.subf %312, %324 : vector<16x32xf32>
    %cst_93 = arith.constant 9.99999974E-6 : f32
    %326 = vector.broadcast %cst_93 : f32 to vector<16x1xf32>
    %327 = arith.addf %323, %326 : vector<16x1xf32>
    %328 = math.rsqrt %327 : vector<16x1xf32>
    %329 = vector.broadcast %328 : vector<16x1xf32> to vector<16x32xf32>
    %330 = arith.mulf %325, %329 : vector<16x32xf32>
    %331 = arith.truncf %330 : vector<16x32xf32> to vector<16x32xbf16>
    %c1_94 = arith.constant 1 : index
    %c0_95 = arith.constant 0 : index
    %c0_96 = arith.constant 0 : index
    %332 = vector.load %arg4[%c1_94, %c0_95, %c0_96] : memref<2x32x128xbf16, #tpu.memory_space<vmem>>, vector<1x32x128xbf16>
    %333 = vector.shape_cast %332 : vector<1x32x128xbf16> to vector<32x128xbf16>
    %cst_97 = arith.constant dense<0.000000e+00> : vector<16x128xf32>
    %334 = tpu.matmul %331, %333, %cst_97 {dimension_numbers = #tpu.dot_dimension_numbers<[1], [0], [0], [1], [0, 0, 1, 1], [], []>} : vector<16x32xbf16>, vector<32x128xbf16>, vector<16x128xf32> -> vector<16x128xf32>
    %335 = vector.shape_cast %188 : vector<128xf32> to vector<1x128xf32>
    %336 = vector.broadcast %335 : vector<1x128xf32> to vector<16x128xf32>
    %337 = arith.addf %334, %336 : vector<16x128xf32>
    %cst_98 = arith.constant 1.702000e+00 : f32
    %338 = vector.broadcast %cst_98 : f32 to vector<16x128xf32>
    %339 = arith.mulf %338, %337 : vector<16x128xf32>
    %340 = arith.negf %339 : vector<16x128xf32>
    %341 = math.exp %340 : vector<16x128xf32>
    %cst_99 = arith.constant 1.000000e+00 : f32
    %342 = vector.broadcast %cst_99 : f32 to vector<16x128xf32>
    %343 = arith.addf %342, %341 : vector<16x128xf32>
    %344 = arith.divf %342, %343 : vector<16x128xf32>
    %345 = arith.mulf %337, %344 : vector<16x128xf32>
    %346 = arith.truncf %345 : vector<16x128xf32> to vector<16x128xbf16>
    %c1_100 = arith.constant 1 : index
    %c0_101 = arith.constant 0 : index
    %c0_102 = arith.constant 0 : index
    %347 = vector.load %arg5[%c1_100, %c0_101, %c0_102] : memref<2x128x32xbf16, #tpu.memory_space<vmem>>, vector<1x128x32xbf16>
    %348 = vector.shape_cast %347 : vector<1x128x32xbf16> to vector<128x32xbf16>
    %cst_103 = arith.constant dense<0.000000e+00> : vector<16x32xf32>
    %349 = tpu.matmul %346, %348, %cst_103 {dimension_numbers = #tpu.dot_dimension_numbers<[1], [0], [0], [1], [0, 0, 1, 1], [], []>} : vector<16x128xbf16>, vector<128x32xbf16>, vector<16x32xf32> -> vector<16x32xf32>
    %350 = vector.shape_cast %190 : vector<32xf32> to vector<1x32xf32>
    %351 = vector.broadcast %350 : vector<1x32xf32> to vector<16x32xf32>
    %352 = arith.addf %349, %351 : vector<16x32xf32>
    %353 = arith.addf %312, %352 : vector<16x32xf32>
    %cst_104 = arith.constant dense<0.000000e+00> : vector<16xf32>
    %354 = vector.multi_reduction <add>, %353, %cst_104 [1] : vector<16x32xf32> to vector<16xf32>
    %355 = vector.shape_cast %354 : vector<16xf32> to vector<16x1xf32>
    %cst_105 = arith.constant 3.200000e+01 : f32
    %356 = vector.broadcast %cst_105 : f32 to vector<16x1xf32>
    %357 = arith.divf %355, %356 : vector<16x1xf32>
    %358 = vector.broadcast %357 : vector<16x1xf32> to vector<16x32xf32>
    %359 = arith.subf %353, %358 : vector<16x32xf32>
    %360 = arith.mulf %359, %359 : vector<16x32xf32>
    %cst_106 = arith.constant dense<0.000000e+00> : vector<16xf32>
    %361 = vector.multi_reduction <add>, %360, %cst_106 [1] : vector<16x32xf32> to vector<16xf32>
    %362 = vector.shape_cast %361 : vector<16xf32> to vector<16x1xf32>
    %cst_107 = arith.constant 3.200000e+01 : f32
    %363 = vector.broadcast %cst_107 : f32 to vector<16x1xf32>
    %364 = arith.divf %362, %363 : vector<16x1xf32>
    %365 = vector.broadcast %357 : vector<16x1xf32> to vector<16x32xf32>
    %366 = arith.subf %353, %365 : vector<16x32xf32>
    %cst_108 = arith.constant 9.99999974E-6 : f32
    %367 = vector.broadcast %cst_108 : f32 to vector<16x1xf32>
    %368 = arith.addf %364, %367 : vector<16x1xf32>
    %369 = math.rsqrt %368 : vector<16x1xf32>
    %370 = vector.broadcast %369 : vector<16x1xf32> to vector<16x32xf32>
    %371 = arith.mulf %366, %370 : vector<16x32xf32>
    %372 = arith.truncf %371 : vector<16x32xf32> to vector<16x32xbf16>
    %c0_109 = arith.constant 0 : index
    %c0_110 = arith.constant 0 : index
    %373 = vector.load %arg7[%c0_109, %c0_110] : memref<32x128xbf16, #tpu.memory_space<vmem>>, vector<32x128xbf16>
    %cst_111 = arith.constant dense<0.000000e+00> : vector<16x128xf32>
    %374 = tpu.matmul %372, %373, %cst_111 {dimension_numbers = #tpu.dot_dimension_numbers<[1], [0], [0], [1], [0, 0, 1, 1], [], []>} : vector<16x32xbf16>, vector<32x128xbf16>, vector<16x128xf32> -> vector<16x128xf32>
    %c0_112 = arith.constant 0 : index
    %c0_113 = arith.constant 0 : index
    %375 = vector.load %arg8[%c0_112, %c0_113] : memref<1x128xf32, #tpu.memory_space<vmem>>, vector<1x128xf32>
    %376 = vector.shape_cast %375 : vector<1x128xf32> to vector<128xf32>
    %377 = vector.shape_cast %376 : vector<128xf32> to vector<1x128xf32>
    %378 = vector.broadcast %377 : vector<1x128xf32> to vector<16x128xf32>
    %379 = arith.addf %374, %378 : vector<16x128xf32>
    %c0_114 = arith.constant 0 : index
    %c0_115 = arith.constant 0 : index
    %c0_116 = arith.constant 0 : index
    %380 = vector.load %arg9[%c0_114, %c0_115, %c0_116] : memref<1x16x128xf32, #tpu.memory_space<vmem>>, vector<1x16x128xf32>
    %381 = vector.shape_cast %380 : vector<1x16x128xf32> to vector<16x128xf32>
    %382 = vector.shape_cast %379 : vector<16x128xf32> to vector<1x16x128xf32>
    tpu.vector_store %arg9[%c0_114, %c0_115, %c0_116], %382 {strides = array<i32>} : memref<1x16x128xf32, #tpu.memory_space<vmem>>, vector<1x16x128xf32>,
    return
  }
  func.func @transform_0(%arg0: i32) -> (i32, i32, i32) {
    %c0_i32 = arith.constant 0 : i32
    %c0_i32_0 = arith.constant 0 : i32
    %c0_i32_1 = arith.constant 0 : i32
    return %arg0, %c0_i32, %c0_i32_0 : i32, i32, i32
  }
  func.func @transform_1(%arg0: i32) -> (i32, i32, i32) {
    %c0_i32 = arith.constant 0 : i32
    %c0_i32_0 = arith.constant 0 : i32
    %c0_i32_1 = arith.constant 0 : i32
    %c0_i32_2 = arith.constant 0 : i32
    return %c0_i32, %c0_i32_0, %c0_i32_1 : i32, i32, i32
  }
  func.func @transform_2(%arg0: i32) -> (i32, i32, i32) {
    %c0_i32 = arith.constant 0 : i32
    %c0_i32_0 = arith.constant 0 : i32
    %c0_i32_1 = arith.constant 0 : i32
    %c0_i32_2 = arith.constant 0 : i32
    return %c0_i32, %c0_i32_0, %c0_i32_1 : i32, i32, i32
  }
  func.func @transform_3(%arg0: i32) -> (i32, i32, i32) {
    %c0_i32 = arith.constant 0 : i32
    %c0_i32_0 = arith.constant 0 : i32
    %c0_i32_1 = arith.constant 0 : i32
    %c0_i32_2 = arith.constant 0 : i32
    return %c0_i32, %c0_i32_0, %c0_i32_1 : i32, i32, i32
  }
  func.func @transform_4(%arg0: i32) -> (i32, i32, i32) {
    %c0_i32 = arith.constant 0 : i32
    %c0_i32_0 = arith.constant 0 : i32
    %c0_i32_1 = arith.constant 0 : i32
    %c0_i32_2 = arith.constant 0 : i32
    return %c0_i32, %c0_i32_0, %c0_i32_1 : i32, i32, i32
  }
  func.func @transform_5(%arg0: i32) -> (i32, i32, i32) {
    %c0_i32 = arith.constant 0 : i32
    %c0_i32_0 = arith.constant 0 : i32
    %c0_i32_1 = arith.constant 0 : i32
    %c0_i32_2 = arith.constant 0 : i32
    return %c0_i32, %c0_i32_0, %c0_i32_1 : i32, i32, i32
  }
  func.func @transform_6(%arg0: i32) -> (i32, i32) {
    %c0_i32 = arith.constant 0 : i32
    %c0_i32_0 = arith.constant 0 : i32
    %c0_i32_1 = arith.constant 0 : i32
    return %c0_i32, %c0_i32_0 : i32, i32
  }
  func.func @transform_7(%arg0: i32) -> (i32, i32) {
    %c0_i32 = arith.constant 0 : i32
    %c0_i32_0 = arith.constant 0 : i32
    %c0_i32_1 = arith.constant 0 : i32
    return %c0_i32, %c0_i32_0 : i32, i32
  }
  func.func @transform_8(%arg0: i32) -> (i32, i32, i32) {
    %c0_i32 = arith.constant 0 : i32
    %c0_i32_0 = arith.constant 0 : i32
    %c0_i32_1 = arith.constant 0 : i32
    return %arg0, %c0_i32, %c0_i32_0 : i32, i32, i32
  }
}

</mosaic_0001>

<bundles_post_ra>
// kernel: igpt_forward.1
= control target key start
LH: loop header
LB: loop body
LE: loop exit
PB: predicated region body
PF: predicated region fallthrough
CT: control target
= control target key end

     0   :  { %13 = vsyncpa [#allocation3], 0  ;;  %s3575_s0 = inlined_call_operand.vmem [shape: f32[2,16,32], index: 0, kind: input, shape index: {}]   ;;  %s3576_s1 = inlined_call_operand.vmem [shape: bf16[2,32,96], index: 1, kind: input, shape index: {}]   ;;  %s3577_s2 = inlined_call_operand.vmem [shape: bf16[2,32,32], index: 2, kind: input, shape index: {}]   ;;  %s3578_s3 = inlined_call_operand.vmem [shape: bf16[2,32,128], index: 3, kind: input, shape index: {}]   ;;  %s3579_s4 = inlined_call_operand.vmem [shape: bf16[2,128,32], index: 4, kind: input, shape index: {}]   ;;  %s3580_s5 = inlined_call_operand.vmem [shape: f32[2,8,128], index: 5, kind: input, shape index: {}]   ;;  %s3581_s6 = inlined_call_operand.vmem [shape: bf16[32,128], index: 6, kind: input, shape index: {}]   ;;  %s3582_s7 = inlined_call_operand.vmem [shape: f32[1,128], index: 7, kind: input, shape index: {}]   ;;  %s3583_s8 = inlined_call_operand.hbm [shape: f32[2,16,128], index: 8, kind: output, shape index: {}]  }
   0x1   :  { %15 = vsyncpa [#allocation3 + $0x1], 0  ;;  %s3023_s27 = smov 0   ;;  %s3025_s28 = smov 0  }
   0x2   :  { %s3027_s29 = smov 0   ;;  %s3029_s30 = smov 0  }
   0x3 LB: > { %s3044_s9 = sadd.s32 4294967295, %s2957_s30   ;;  %s2314_s10 = sadd.s32 4294967294, %s2957_s30   ;;  %s2957_s30 = sphi %s3029_s30, %s3606_s30   ;;  %s2953_s29 = sphi %s3027_s29, %s3605_s29   ;;  %s2949_s28 = sphi %s3025_s28, %s3604_s28   ;;  %s2945_s27 = sphi %s3023_s27, %s3603_s27  }
   0x4   : > { %s3048_s11 = sadd.s32 1, %s2957_s30   ;;  %s201_s12 = sadd.s32 1, %s2953_s29 }
   0x5   : > { %s198_s13 = ssub.s32 %s2957_s30, %s3048_s11  ;;  %p211_p0 = scmp.ne.s32.totalorder %s2953_s29, %s2949_s28 }
   0x6   : > { %p199_p1 = scmp.eq.s32.totalorder %s198_s13, 0  ;;  %p212_p2 = scmp.eq.s32.totalorder %s3044_s9, 1 }
   0x7   : > { %p217_p3 = scmp.ne.s32.totalorder %s2949_s28, %s2945_s27  ;;  %p218_p4 = scmp.eq.s32.totalorder %s2314_s10, 1 }
   0x8   : > { %s3059_s14 = scalar_select %p199_p1, %s2953_s29, %s201_s12  }
   0x9   : > { %p3061_p5 = por %p212_p2, %p211_p0  ;;  %p3065_p6 = por %p218_p4, %p217_p3 }
   0xa   : > { %p2317_p7 = scmp.ge.s32.totalorder %s2957_s30, 1  ;;  %p265_p8 = scmp.lt.s32.totalorder %s2957_s30, 3 }
   0xc   : > { %p266_p9 = pnand %p2317_p7, %p265_p8 }
   0xd   : > { %p299_p10 = scmp.lt.s32.totalorder (!%p266_p9), %s3044_s9, 1  ;;  %vm317_vm0 = vcmask (!%p266_p9), 261120   ;;  %v2765_v14 = vld [vmem:[%s3576_s1] sm:$0xff] (!%p266_p9)   ;;  %v2959_v15 = vmov (!%p266_p9), 0.0   ;;  %vm2960_vm1 = vmmov (!%p266_p9), 0   ;;  %v2766_v16 = vld [vmem:[%s3576_s1 + $0x8] sm:$0xff] (!%p266_p9)   ;;  %v307_v28 = vlaneseq (!%p266_p9) }
   0xe   : > { %269 = sbr.rel (%p266_p9) target bundleno = 6249 (0x1869), region = 52  ;;  %2486 = vmatprep.subr.bf16.mxu1 (!%p266_p9), %v2959_v15  ;;  %2490 = vmatprep.mubr.msk.bf16.mxu1 (!%p266_p9), %vm2960_vm1, %v2959_v15  ;;  %v3111_v31 = vld [vmem:[%s3580_s5] sm:$0xff] (!%p266_p9)  ;;  %s2961_s12 = smov (!%p266_p9), 88   ;;  %vm414_vm2 = vcmask (!%p266_p9), 64512   ;;  %v2968_v54 = vmov (!%p266_p9), -1e+30  }
   0xf   : > { %2487 = vmatpush3.bf16.msra.mxu1 (!%p266_p9), %v2765_v14  ;;  %2500 = vmatprep.subr.bf16.mxu0 (!%p266_p9), %v2959_v15  ;;  %v3105_v29 = vshrl.u32 (!%p266_p9), %v307_v28, 7  ;;  %s2962_s13 = smov (!%p266_p9), 96   ;;  %s2965_s19 = smov (!%p266_p9), 80   ;;  %v311_v51 = vand.u32 (!%p266_p9), 127, %v307_v28  ;;  %vm466_vm5 = vcmask (!%p266_p9), 130048   ;;  %vm940_vm6 = vcmask (!%p266_p9), 195584  }
  0x10   : > { %2488 = vmatprep.subr.bf16.mxu1 (!%p266_p9), %v2959_v15  ;;  %2502 = vmatprep.mubr.msk.bf16.mxu0 (!%p266_p9), %vm2960_vm1, %v2959_v15  ;;  %s3591_s20 = smov (!%p266_p9), 104   ;;  %s2969_s22 = smov (!%p266_p9), 64  }
  0x11   : > { %v352_v30 = vsub.s32 (!%p266_p9), 0, %v3105_v29  ;;  %v309_v52 = vadd.s32 (!%p266_p9), 8, %v3105_v29  ;;  %vm312_vm3 = vcmp.le.s32.totalorder (!%p266_p9), %v311_v51, %v3105_v29  ;;  %s3586_s23 = smov (!%p266_p9), 48   ;;  %s3584_s24 = smov (!%p266_p9), 40  }
  0x12   : > { %v3155_v55 = vsel (!%p266_p9), %vm312_vm3, 0.0, %v2968_v54  ;;  %s3585_s25 = smov (!%p266_p9), 56   ;;  %s3588_s26 = smov (!%p266_p9), 16  }
  0x13   : > { %2489 = vmatpush3.bf16.msra.mxu1 (!%p266_p9), %v2766_v16  ;;  %v353_v32 = vrot.slane (!%p266_p9), %v3111_v31, %v352_v30  ;;  %vm313_vm4 = vcmp.le.s32.totalorder (!%p266_p9), %v311_v51, %v309_v52  ;;  %s3587_s10 = smov (!%p266_p9), 24  }
  0x14   : > { %2494 = vmatprep.subr.bf16.mxu1 (!%p266_p9), %v2959_v15  ;;  %v3157_v59 = vsel (!%p266_p9), %vm313_vm4, 0.0, %v2968_v54 }
  0x15   : > { %s300_s17 = scalar_select %p299_p10, %s3044_s9, 1 }
  0x17   : > { %s2413_s18 = sshll.u32 %s300_s17, 4  ;;  %s2963_s17 = smov 120  }
  0x18   : > { %s303_s21 = scalar_lea.vmem %s3575_s0, %s2413_s18  ;;  %s3592_s18 = smov 112  }
  0x19   : > { %v3076_v0 = vld [vmem:[%s303_s21] sm:$0xff]  ;;  %v3078_v1 = vld [vmem:[%s303_s21 + $0x8] sm:$0xff]  ;;  %s2967_s21 = smov 72  }
  0x1a   : > { %v318_v2 = vsel %vm317_vm0, %v3076_v0, 0.0  ;;  %v321_v3 = vsel %vm317_vm0, %v3078_v1, 0.0 }
  0x1b   : > { %319 = vadd.xlane.f32.xlu0 %v318_v2 }
  0x1f   : > { %322 = vadd.xlane.f32.xlu0 %v321_v3 }
  0xa8   : > { %v320_v4 = vpop.xlane.xlu0 %319 }
  0xa9   : > { %v325_v5 = vmul.f32 0.03125, %v320_v4 }
  0xab   : > { %v327_v6 = vsub.f32 %v3076_v0, %v325_v5 }
  0xac   : > { %v323_v7 = vpop.xlane.xlu0 %322 }
  0xad   : > { %v326_v8 = vmul.f32 0.03125, %v323_v7  ;;  %v329_v9 = vmul.f32 %v327_v6, %v327_v6 }
  0xaf   : > { %v328_v10 = vsub.f32 %v3078_v1, %v326_v8  ;;  %v331_v11 = vsel %vm317_vm0, %v329_v9, 0.0 }
  0xb0   : > { %332 = vadd.xlane.f32.xlu1 %v331_v11 }
  0xb1   : > { %v330_v12 = vmul.f32 %v328_v10, %v328_v10 }
  0xb3   : > { %v334_v13 = vsel %vm317_vm0, %v330_v12, 0.0 }
  0xb4   : > { %335 = vadd.xlane.f32.xlu1 %v334_v13 }
 0x13d   : > { %v333_v17 = vpop.xlane.xlu1 %332 }
 0x13e   : > { %v337_v18 = vmul.f32 0.03125, %v333_v17 }
 0x140   : > { %v339_v19 = vadd.f32 1e-05, %v337_v18 }
 0x141   : > { %v336_v20 = vpop.xlane.xlu1 %335 }
 0x142   : > { %v338_v21 = vmul.f32 0.03125, %v336_v20  ;;  %2795 = vrsqrt.f32 %v339_v19 }
 0x144   : > { %v340_v22 = vadd.f32 1e-05, %v338_v21 }
 0x146   : > { %2797 = vrsqrt.f32 %v340_v22 }
 0x14c   : > { %v2796_v23 = vpop.eup %2795 }
 0x14d   : > { %v343_v25 = vmul.f32 %v2796_v23, %v327_v6 }
 0x150   : > { %v2798_v24 = vpop.eup %2797 }
 0x151   : > { %v344_v26 = vmul.f32 %v2798_v24, %v328_v10 }
 0x153   : > { %v345_v27 = vpack.c.bf16 %v344_v26, %v343_v25 }
 0x155   : > { %2491 = vmatmul.mubr.msk.bf16.vlgmr.msra.gmra.mrb[0].mxu1 %vm317_vm0, %v345_v27 }
 0x156   : > { %2496 = vmatprep.mubr.msk.bf16.mxu1 %vm2960_vm1, %v2959_v15 }
 0x228   : > { %v403_v33 = vpop.f32.mrb[0].mxu1 }
 0x229   : > { %v2492_v34 = vpop.f32.mrb[1].mxu1  ;;  %v404_v36 = vadd.f32 %v403_v33, %v353_v32 }
 0x22a   : > { %v406_v35 = vpop.f32.mrb[2].mxu1 }
 0x22b   : > { %v407_v37 = vadd.f32 %v406_v35, %v353_v32  ;;  %v2493_v38 = vpop.f32.mrb[3].mxu1 }
 0x22d   : > { %v3116_v39 = vpack.c.bf16 %v407_v37, %v404_v36 }
 0x22f   : > { %539 = vrot.lane.b32.xlu1 %v3116_v39, %s2961_s12  ;;  %412 = vrot.lane.b32.xlu0 %v3116_v39, %s2962_s13 }
 0x233   : > { %537 = vrot.lane.b32.xlu1 %v3116_v39, %s2963_s17  ;;  %662 = vrot.lane.b32.xlu0 %v3116_v39, %s3592_s18  ;;  %s3602_s18 = smov 24  }
 0x237   : > { %664 = vrot.lane.b32.xlu1 %v3116_v39, %s2965_s19  ;;  %787 = vrot.lane.b32.xlu0 %v3116_v39, %s3591_s20 }
 0x23b   : > { %789 = vrot.lane.b32.xlu1 %v3116_v39, %s2967_s21 }
 0x2a1   : > { %v413_v40 = vpop.permute.xlu0 %412  ;;  %v540_v42 = vpop.permute.xlu1 %539 }
 0x2a2   : > { %v419_v41 = vsel %vm414_vm2, %v413_v40, 0  ;;  %v545_v44 = vsel %vm414_vm2, %v540_v42, 0 }
 0x2a3   : > { %2495 = vmatpush3.bf16.xpose.msra.mxu1 %v419_v41 }
 0x2a4   : > { %2506 = vmatprep.subr.bf16.mxu1 %v2959_v15 }
 0x2a5   : > { %v538_v43 = vpop.permute.xlu1 %537  ;;  %v663_v48 = vpop.permute.xlu0 %662 }
 0x2a9   : > { %v665_v45 = vpop.permute.xlu1 %664  ;;  %v788_v50 = vpop.permute.xlu0 %787 }
 0x2aa   : > { %2497 = vmatmul.mubr.msk.bf16.vlgmr.msra.gmra.mrb[4].mxu1 %vm414_vm2, %v3116_v39  ;;  %v670_v46 = vsel %vm414_vm2, %v665_v45, 0 }
 0x2ab   : > { %2507 = vmatpush3.bf16.xpose.msra.mxu1 %v545_v44  ;;  %2508 = vmatprep.mubr.msk.bf16.mxu1 %vm2960_vm1, %v2959_v15 }
 0x2ac   : > { %2518 = vmatprep.subr.bf16.mxu1 %v2959_v15 }
 0x2ad   : > { %v790_v47 = vpop.permute.xlu1 %789 }
 0x2ae   : > { %v795_v49 = vsel %vm414_vm2, %v790_v47, 0 }
 0x2b2   : > { %2509 = vmatmul.mubr.msk.bf16.vlgmr.msra.gmra.mrb[8].mxu1 %vm414_vm2, %v538_v43 }
 0x2b3   : > { %2519 = vmatpush3.bf16.xpose.msra.mxu1 %v670_v46  ;;  %2520 = vmatprep.mubr.msk.bf16.mxu1 %vm2960_vm1, %v2959_v15 }
 0x2b4   : > { %2530 = vmatprep.subr.bf16.mxu1 %v2959_v15 }
 0x2ba   : > { %2521 = vmatmul.mubr.msk.bf16.vlgmr.msra.gmra.mrb[12].mxu1 %vm414_vm2, %v663_v48 }
 0x2bb   : > { %2531 = vmatpush3.bf16.xpose.msra.mxu1 %v795_v49  ;;  %2532 = vmatprep.mubr.msk.bf16.mxu1 %vm2960_vm1, %v2959_v15 }
 0x2bc   : > { %2542 = vmatprep.subr.bf16.mxu1 %v2959_v15 }
 0x2c2   : > { %2533 = vmatmul.mubr.msk.bf16.vlgmr.msra.gmra.mrb[16].mxu1 %vm414_vm2, %v788_v50 }
 0x2c3   : > { %2546 = vmatprep.mubr.msk.bf16.mxu1 %vm2960_vm1, %v2959_v15 }
 0x37d   : > { %v455_v53 = vpop.f32.mrb[4].mxu1 }
 0x37e   : > { %v462_v56 = vmul.f32 0.35355338, %v455_v53  ;;  %v2498_v57 = vpop.f32.mrb[5].mxu1 }
 0x37f   : > { %v458_v58 = vpop.f32.mrb[6].mxu1 }
 0x380   : > { %v463_v60 = vmul.f32 0.35355338, %v458_v58  ;;  %v2499_v61 = vpop.f32.mrb[7].mxu1  ;;  %v464_v62 = vadd.f32 %v462_v56, %v3155_v55 }
 0x382   : > { %v467_v63 = vsel %vm466_vm5, %v464_v62, -inf  ;;  %v465_v2 = vadd.f32 %v463_v60, %v3157_v59 }
 0x383   : > { %468 = vmax.xlane.f32.xlu1 %v467_v63 }
 0x384   : > { %v470_v3 = vsel %vm466_vm5, %v465_v2, -inf }
 0x385   : > { %471 = vmax.xlane.f32.xlu0 %v470_v3  ;;  %v581_v4 = vpop.f32.mrb[8].mxu1 }
 0x386   : > { %v588_v5 = vmul.f32 0.35355338, %v581_v4  ;;  %v2510_v6 = vpop.f32.mrb[9].mxu1 }
 0x387   : > { %v584_v7 = vpop.f32.mrb[10].mxu1 }
 0x388   : > { %v589_v8 = vmul.f32 0.35355338, %v584_v7  ;;  %v2511_v9 = vpop.f32.mrb[11].mxu1  ;;  %v590_v10 = vadd.f32 %v588_v5, %v3155_v55 }
 0x38a   : > { %v592_v11 = vsel %vm466_vm5, %v590_v10, -inf  ;;  %v591_v12 = vadd.f32 %v589_v8, %v3157_v59 }
 0x38b   : > { %593 = vmax.xlane.f32.xlu0 %v592_v11 }
 0x38c   : > { %v595_v17 = vsel %vm466_vm5, %v591_v12, -inf }
 0x38d   : > { %v706_v13 = vpop.f32.mrb[12].mxu1 }
 0x38e   : > { %v713_v14 = vmul.f32 0.35355338, %v706_v13  ;;  %v2522_v16 = vpop.f32.mrb[13].mxu1 }
 0x38f   : > { %596 = vmax.xlane.f32.xlu0 %v595_v17  ;;  %v709_v18 = vpop.f32.mrb[14].mxu1 }
 0x390   : > { %v714_v19 = vmul.f32 0.35355338, %v709_v18  ;;  %v2523_v20 = vpop.f32.mrb[15].mxu1  ;;  %v715_v21 = vadd.f32 %v713_v14, %v3155_v55 }
 0x392   : > { %v717_v22 = vsel %vm466_vm5, %v715_v21, -inf  ;;  %v716_v23 = vadd.f32 %v714_v19, %v3157_v59 }
 0x393   : > { %718 = vmax.xlane.f32.xlu1 %v717_v22 }
 0x394   : > { %v720_v24 = vsel %vm466_vm5, %v716_v23, -inf }
 0x395   : > { %721 = vmax.xlane.f32.xlu0 %v720_v24  ;;  %v831_v25 = vpop.f32.mrb[16].mxu1 }
 0x396   : > { %v838_v26 = vmul.f32 0.35355338, %v831_v25  ;;  %v2534_v27 = vpop.f32.mrb[17].mxu1 }
 0x397   : > { %v834_v28 = vpop.f32.mrb[18].mxu1 }
 0x398   : > { %v839_v32 = vmul.f32 0.35355338, %v834_v28  ;;  %v2535_v33 = vpop.f32.mrb[19].mxu1  ;;  %v840_v34 = vadd.f32 %v838_v26, %v3155_v55 }
 0x39a   : > { %v842_v35 = vsel %vm466_vm5, %v840_v34, -inf  ;;  %v841_v36 = vadd.f32 %v839_v32, %v3157_v59 }
 0x39b   : > { %843 = vmax.xlane.f32.xlu1 %v842_v35 }
 0x39c   : > { %v845_v37 = vsel %vm466_vm5, %v841_v36, -inf }
 0x39d   : > { %846 = vmax.xlane.f32.xlu0 %v845_v37 }
 0x3ac   : > { %490 = vrot.lane.b32.xlu1 %v3116_v39, %s2969_s22 }
 0x410   : > { %v469_v38 = vpop.xlane.xlu1 %468 }
 0x411   : > { %v473_v40 = vsub.f32 %v464_v62, %v469_v38 }
 0x412   : > { %v472_v41 = vpop.xlane.xlu0 %471 }
 0x413   : > { %v475_v42 = vmul.f32 1.442695, %v473_v40  ;;  %v474_v43 = vsub.f32 %v465_v2, %v472_v41 }
 0x415   : > { %2799 = vpow2.f32 %v475_v42  ;;  %v477_v44 = vmul.f32 1.442695, %v474_v43 }
 0x417   : > { %2801 = vpow2.f32 %v477_v44 }
 0x418   : > { %v594_v45 = vpop.xlane.xlu0 %593 }
 0x419   : > { %v598_v46 = vsub.f32 %v590_v10, %v594_v45 }
 0x41b   : > { %v600_v47 = vmul.f32 1.442695, %v598_v46 }
 0x41c   : > { %v597_v48 = vpop.xlane.xlu0 %596 }
 0x41d   : > { %2803 = vpow2.f32 %v600_v47  ;;  %v599_v49 = vsub.f32 %v591_v12, %v597_v48 }
 0x41f   : > { %v2800_v50 = vpop.eup %2799  ;;  %v602_v51 = vmul.f32 1.442695, %v599_v49 }
 0x420   : > { %v719_v52 = vpop.xlane.xlu1 %718  ;;  %v479_v53 = vsel %vm466_vm5, %v2800_v50, 0.0 }
 0x421   : > { %v2802_v54 = vpop.eup %2801  ;;  %2805 = vpow2.f32 %v602_v51  ;;  %v723_v56 = vsub.f32 %v715_v21, %v719_v52  ;;  %480 = vadd.xlane.f32.xlu1 %v479_v53 }
 0x422   : > { %v722_v57 = vpop.xlane.xlu0 %721  ;;  %v482_v58 = vsel %vm466_vm5, %v2802_v54, 0.0 }
 0x423   : > { %v725_v60 = vmul.f32 1.442695, %v723_v56  ;;  %v724_v61 = vsub.f32 %v716_v23, %v722_v57  ;;  %483 = vadd.xlane.f32.xlu0 %v482_v58 }
 0x425   : > { %2807 = vpow2.f32 %v725_v60  ;;  %v727_v62 = vmul.f32 1.442695, %v724_v61 }
 0x427   : > { %v2804_v63 = vpop.eup %2803  ;;  %2809 = vpow2.f32 %v727_v62 }
 0x428   : > { %v844_v2 = vpop.xlane.xlu1 %843  ;;  %v604_v3 = vsel %vm466_vm5, %v2804_v63, 0.0 }
 0x429   : > { %v848_v4 = vsub.f32 %v840_v34, %v844_v2  ;;  %605 = vadd.xlane.f32.xlu1 %v604_v3  ;;  %v2767_v2 = vld [vmem:[%s3577_s2] sm:$0xff]  }
 0x42a   : > { %v847_v5 = vpop.xlane.xlu0 %846  ;;  %2543 = vmatpush3.bf16.msra.mxu1 %v2767_v2 }
 0x42b   : > { %v2806_v6 = vpop.eup %2805  ;;  %v850_v7 = vmul.f32 1.442695, %v848_v4  ;;  %v849_v8 = vsub.f32 %v841_v36, %v847_v5  ;;  %2544 = vmatprep.subr.bf16.mxu1 %v2959_v15 }
 0x42c   : > { %v491_v9 = vpop.permute.xlu1 %490  ;;  %v607_v10 = vsel %vm466_vm5, %v2806_v6, 0.0 }
 0x42d   : > { %2811 = vpow2.f32 %v850_v7  ;;  %v852_v11 = vmul.f32 1.442695, %v849_v8  ;;  %2501 = vmatpush3.bf16.msra.mxu0 %v491_v9  ;;  %608 = vadd.xlane.f32.xlu0 %v607_v10  ;;  %v2768_v7 = vld [vmem:[%s3577_s2 + $0x8] sm:$0xff]  }
 0x42e   : > { %2512 = vmatprep.subr.bf16.mxu0 %v2959_v15  ;;  %2545 = vmatpush3.bf16.msra.mxu1 %v2768_v7 }
 0x42f   : > { %v2808_v12 = vpop.eup %2807  ;;  %2813 = vpow2.f32 %v852_v11  ;;  %2558 = vmatprep.subr.bf16.mxu1 %v2959_v15 }
 0x430   : > { %v729_v13 = vsel %vm466_vm5, %v2808_v12, 0.0 }
 0x431   : > { %v2810_v14 = vpop.eup %2809  ;;  %730 = vadd.xlane.f32.xlu1 %v729_v13 }
 0x432   : > { %v732_v16 = vsel %vm466_vm5, %v2810_v14, 0.0 }
 0x433   : > { %733 = vadd.xlane.f32.xlu0 %v732_v16 }
 0x437   : > { %v2812_v17 = vpop.eup %2811 }
 0x438   : > { %v854_v18 = vsel %vm466_vm5, %v2812_v17, 0.0 }
 0x439   : > { %v2814_v19 = vpop.eup %2813  ;;  %855 = vadd.xlane.f32.xlu1 %v854_v18 }
 0x43a   : > { %v857_v20 = vsel %vm466_vm5, %v2814_v19, 0.0 }
 0x43b   : > { %858 = vadd.xlane.f32.xlu0 %v857_v20 }
 0x44a   : > { %740 = vrot.lane.b32.xlu1 %v3116_v39, %s3586_s23  ;;  %s3600_s23 = smov 8  }
 0x44e   : > { %865 = vrot.lane.b32.xlu1 %v3116_v39, %s3584_s24  ;;  %s3589_s24 = smov 8  }
 0x451   : > { %615 = vrot.lane.b32.xlu0 %v3116_v39, %s3585_s25  ;;  %s3601_s25 = smov 16  }
 0x4ae   : > { %v481_v21 = vpop.xlane.xlu1 %480 }
 0x4af   : > { %2815 = vrcp.f32 %v481_v21 }
 0x4b0   : > { %v484_v22 = vpop.xlane.xlu0 %483 }
 0x4b1   : > { %2817 = vrcp.f32 %v484_v22 }
 0x4b6   : > { %v606_v26 = vpop.xlane.xlu1 %605 }
 0x4b9   : > { %v2816_v23 = vpop.eup %2815 }
 0x4ba   : > { %v609_v24 = vpop.xlane.xlu0 %608  ;;  %v487_v27 = vmul.f32 %v2816_v23, %v2800_v50 }
 0x4bb   : > { %v2818_v25 = vpop.eup %2817  ;;  %2819 = vrcp.f32 %v609_v24 }
 0x4bc   : > { %v488_v28 = vmul.f32 %v2818_v25, %v2802_v54  ;;  %2821 = vrcp.f32 %v606_v26 }
 0x4be   : > { %v489_v32 = vpack.c.bf16 %v488_v28, %v487_v27  ;;  %v731_v39 = vpop.xlane.xlu1 %730 }
 0x4c0   : > { %2503 = vmatmul.mubr.msk.bf16.vlgmr.msra.gmra.mrb[0].mxu0 %vm466_vm5, %v489_v32  ;;  %v734_v33 = vpop.xlane.xlu0 %733 }
 0x4c1   : > { %2514 = vmatprep.mubr.msk.bf16.mxu0 %vm2960_vm1, %v2959_v15  ;;  %2823 = vrcp.f32 %v734_v33 }
 0x4c2   : > { %2825 = vrcp.f32 %v731_v39 }
 0x4c5   : > { %v2820_v34 = vpop.eup %2819 }
 0x4c6   : > { %v2822_v36 = vpop.eup %2821  ;;  %v613_v37 = vmul.f32 %v2820_v34, %v2806_v6  ;;  %v856_v38 = vpop.xlane.xlu1 %855 }
 0x4c7   : > { %v612_v40 = vmul.f32 %v2822_v36, %v2804_v63 }
 0x4c8   : > { %v859_v35 = vpop.xlane.xlu0 %858 }
 0x4c9   : > { %2827 = vrcp.f32 %v859_v35  ;;  %v614_v42 = vpack.c.bf16 %v613_v37, %v612_v40  ;;  %v950_v35 = vsub.s32 1, %v3105_v29 }
 0x4ca   : > { %2829 = vrcp.f32 %v856_v38  ;;  %v741_v44 = vpop.permute.xlu1 %740 }
 0x4cb   : > { %v2824_v43 = vpop.eup %2823  ;;  %v951_v36 = vrot.slane %v3111_v31, %v950_v35 }
 0x4cc   : > { %v616_v41 = vpop.permute.xlu0 %615  ;;  %v2826_v45 = vpop.eup %2825  ;;  %v738_v46 = vmul.f32 %v2824_v43, %v2810_v14 }
 0x4cd   : > { %2513 = vmatpush3.bf16.msra.mxu0 %v616_v41  ;;  %v737_v47 = vmul.f32 %v2826_v45, %v2808_v12 }
 0x4ce   : > { %2524 = vmatprep.subr.bf16.mxu0 %v2959_v15  ;;  %v866_v50 = vpop.permute.xlu1 %865 }
 0x4cf   : > { %v739_v48 = vpack.c.bf16 %v738_v46, %v737_v47 }
 0x4d0   : > { %2515 = vmatmul.mubr.msk.bf16.vlgmr.msra.gmra.mrb[4].mxu0 %vm466_vm5, %v614_v42 }
 0x4d1   : > { %2525 = vmatpush3.bf16.msra.mxu0 %v741_v44  ;;  %2526 = vmatprep.mubr.msk.bf16.mxu0 %vm2960_vm1, %v2959_v15 }
 0x4d2   : > { %2536 = vmatprep.subr.bf16.mxu0 %v2959_v15 }
 0x4d3   : > { %v2828_v49 = vpop.eup %2827 }
 0x4d4   : > { %v2830_v51 = vpop.eup %2829  ;;  %v863_v52 = vmul.f32 %v2828_v49, %v2814_v19 }
 0x4d5   : > { %v862_v53 = vmul.f32 %v2830_v51, %v2812_v17 }
 0x4d7   : > { %v864_v54 = vpack.c.bf16 %v863_v52, %v862_v53 }
 0x4d8   : > { %2527 = vmatmul.mubr.msk.bf16.vlgmr.msra.gmra.mrb[8].mxu0 %vm466_vm5, %v739_v48 }
 0x4d9   : > { %2537 = vmatpush3.bf16.msra.mxu0 %v866_v50  ;;  %2538 = vmatprep.mubr.msk.bf16.mxu0 %vm2960_vm1, %v2959_v15 }
 0x4da   : > { %2550 = vmatprep.subr.bf16.mxu0 %v2959_v15 }
 0x4e0   : > { %2539 = vmatmul.mubr.msk.bf16.vlgmr.msra.gmra.mrb[12].mxu0 %vm466_vm5, %v864_v54 }
 0x4e1   : > { %2554 = vmatprep.mubr.msk.bf16.mxu0 %vm2960_vm1, %v2959_v15 }
 0x593   : > { %v530_v56 = vpop.f32.mrb[0].mxu0 }
 0x594   : > { %v2504_v57 = vpop.f32.mrb[1].mxu0 }
 0x595   : > { %v533_v58 = vpop.f32.mrb[2].mxu0  ;;  %v2769_v57 = vld [vmem:[%s3578_s3] sm:$0xff]  }
 0x596   : > { %v2505_v60 = vpop.f32.mrb[3].mxu0  ;;  %2551 = vmatpush3.bf16.msra.mxu0 %v2769_v57 }
 0x597   : > { %2552 = vmatprep.subr.bf16.mxu0 %v2959_v15 }
 0x5a3   : > { %v655_v61 = vpop.f32.mrb[4].mxu0 }
 0x5a4   : > { %v2516_v62 = vpop.f32.mrb[5].mxu0 }
 0x5a5   : > { %v658_v63 = vpop.f32.mrb[6].mxu0 }
 0x5a6   : > { %v2735_v3 = vpack.i.bf16 %v658_v63, %v655_v61  ;;  %v2517_v4 = vpop.f32.mrb[7].mxu0 }
 0x5a8   : > { %2736 = vrot.lane.b32.xlu1 %v2735_v3, %s3589_s24 }
 0x5ab   : > { %v780_v5 = vpop.f32.mrb[8].mxu0 }
 0x5ac   : > { %v2528_v6 = vpop.f32.mrb[9].mxu0 }
 0x5ad   : > { %v783_v8 = vpop.f32.mrb[10].mxu0 }
 0x5ae   : > { %v2740_v9 = vpack.i.bf16 %v783_v8, %v780_v5  ;;  %v2529_v10 = vpop.f32.mrb[11].mxu0 }
 0x5af   : > { %v2772_v10 = vld [vmem:[%s3579_s4 + $0x8] sm:$0xff]  }
 0x5b0   : > { %2741 = vrot.lane.b32.xlu0 %v2740_v9, %s3588_s26  ;;  %v2771_v9 = vld [vmem:[%s3579_s4] sm:$0xff]   ;;  %s296_s26 = sand.u32 1, %s2949_s28  }
 0x5b1   : > { %s3533_s24 = scalar_lea.sflag [#allocation3], %s296_s26 }
 0x5b3   : > { %v905_v11 = vpop.f32.mrb[12].mxu0 }
 0x5b4   : > { %v2540_v12 = vpop.f32.mrb[13].mxu0 }
 0x5b5   : > { %v908_v13 = vpop.f32.mrb[14].mxu0  ;;  %v2774_v12 = vld [vmem:[%s3579_s4 + $0x18] sm:$0xff]  }
 0x5b6   : > { %v2745_v14 = vpack.i.bf16 %v908_v13, %v905_v11  ;;  %v2541_v16 = vpop.f32.mrb[15].mxu0  ;;  %v2773_v11 = vld [vmem:[%s3579_s4 + $0x10] sm:$0xff]   ;;  %v2775_v13 = vld [vmem:[%s3579_s4 + $0x20] sm:$0xff]  }
 0x5b7   : > { %v2777_v16 = vld [vmem:[%s3579_s4 + $0x30] sm:$0xff]  }
 0x5b8   : > { %2746 = vrot.lane.b32.xlu1 %v2745_v14, %s3587_s10  ;;  %v2776_v14 = vld [vmem:[%s3579_s4 + $0x28] sm:$0xff]  }
 0x61a   : > { %v2737_v17 = vpop.permute.xlu1 %2736 }
 0x61b   : > { %v2739_v19 = vunpack.i.h.bf16 %v2737_v17  ;;  %v2738_v20 = vunpack.i.l.bf16 %v2737_v17  ;;  %v2778_v17 = vld [vmem:[%s3579_s4 + $0x38] sm:$0xff]  }
 0x61d   : > { %v937_v24 = vsel %vm414_vm2, %v533_v58, %v2739_v19  ;;  %v936_v25 = vsel %vm414_vm2, %v530_v56, %v2738_v20  ;;  %v2770_v58 = vld [vmem:[%s3578_s3 + $0x8] sm:$0xff]  }
 0x61e   : > { %2553 = vmatpush3.bf16.msra.mxu0 %v2770_v58 }
 0x61f   : > { %2578 = vmatprep.subr.bf16.mxu0 %v2959_v15 }
 0x622   : > { %v2742_v18 = vpop.permute.xlu0 %2741 }
 0x623   : > { %v2744_v21 = vunpack.i.h.bf16 %v2742_v18  ;;  %v2743_v22 = vunpack.i.l.bf16 %v2742_v18  ;;  %v1043_v18 = vsub.s32 2, %v3105_v29 }
 0x625   : > { %v939_v28 = vsel %vm466_vm5, %v937_v24, %v2744_v21  ;;  %v938_v32 = vsel %vm466_vm5, %v936_v25, %v2743_v22  ;;  %v1044_v19 = vrot.slane %v3111_v31, %v1043_v18 }
 0x62a   : > { %v2747_v23 = vpop.permute.xlu1 %2746 }
 0x62b   : > { %v2749_v26 = vunpack.i.h.bf16 %v2747_v23  ;;  %v2748_v27 = vunpack.i.l.bf16 %v2747_v23 }
 0x62d   : > { %v942_v33 = vsel %vm940_vm6, %v939_v28, %v2749_v26  ;;  %v941_v39 = vsel %vm940_vm6, %v938_v32, %v2748_v27 }
 0x62e   : > { %v943_v34 = vpack.c.bf16 %v942_v33, %v941_v39 }
 0x630   : > { %2547 = vmatmul.mubr.msk.bf16.vlgmr.msra.gmra.mrb[20].mxu1 %vm317_vm0, %v943_v34 }
 0x631   : > { %2574 = vmatprep.mubr.msk.bf16.mxu1 %vm2960_vm1, %v2959_v15  ;;  %2559 = vmatpush3.bf16.msra.mxu1 %v2771_v9 }
 0x632   : > { %2560 = vmatprep.subr.bf16.mxu1 %v2959_v15 }
 0x635   : > { %2561 = vmatpush3.bf16.msra.mxu1 %v2772_v10 }
 0x636   : > { %2562 = vmatprep.subr.bf16.mxu1 %v2959_v15 }
 0x639   : > { %2563 = vmatpush3.bf16.msra.mxu1 %v2773_v11 }
 0x63a   : > { %2564 = vmatprep.subr.bf16.mxu1 %v2959_v15 }
 0x63d   : > { %2565 = vmatpush3.bf16.msra.mxu1 %v2774_v12 }
 0x63e   : > { %2566 = vmatprep.subr.bf16.mxu1 %v2959_v15 }
 0x641   : > { %2567 = vmatpush3.bf16.msra.mxu1 %v2775_v13 }
 0x642   : > { %2568 = vmatprep.subr.bf16.mxu1 %v2959_v15 }
 0x645   : > { %2569 = vmatpush3.bf16.msra.mxu1 %v2776_v14 }
 0x646   : > { %2570 = vmatprep.subr.bf16.mxu1 %v2959_v15 }
 0x649   : > { %2571 = vmatpush3.bf16.msra.mxu1 %v2777_v16  ;;  %v3326_v16 = vld [vmem:[%s3580_s5 + $0x8] sm:$0xff] }
 0x64a   : > { %2572 = vmatprep.subr.bf16.mxu1 %v2959_v15 }
 0x64d   : > { %2573 = vmatpush3.bf16.msra.mxu1 %v2778_v17  ;;  %v1266_v17 = vrot.slane %v3326_v16, %v352_v30 }
 0x64e   : > { %2604 = vmatprep.subr.bf16.mxu1 %v2959_v15 }
 0x703   : > { %v1001_v37 = vpop.f32.mrb[20].mxu1 }
 0x704   : > { %v1002_v38 = vadd.f32 %v1001_v37, %v951_v36  ;;  %v2548_v40 = vpop.f32.mrb[21].mxu1 }
 0x705   : > { %v1004_v41 = vpop.f32.mrb[22].mxu1 }
 0x706   : > { %v3232_v42 = vadd.f32 %v1002_v38, %v3076_v0  ;;  %v1005_v43 = vadd.f32 %v1004_v41, %v951_v36  ;;  %v2549_v44 = vpop.f32.mrb[23].mxu1 }
 0x707   : > { %v1136_v44 = vsub.s32 3, %v3105_v29 }
 0x708   : > { %v3235_v45 = vadd.f32 %v1005_v43, %v3078_v1  ;;  %v1010_v46 = vsel %vm317_vm0, %v3232_v42, 0.0 }
 0x709   : > { %1011 = vadd.xlane.f32.xlu0 %v1010_v46  ;;  %v1137_v46 = vrot.slane %v3111_v31, %v1136_v44 }
 0x70a   : > { %v1013_v47 = vsel %vm317_vm0, %v3235_v45, 0.0 }
 0x70b   : > { %1014 = vadd.xlane.f32.xlu1 %v1013_v47 }
 0x796   : > { %v1012_v48 = vpop.xlane.xlu0 %1011 }
 0x797   : > { %v1016_v49 = vmul.f32 0.03125, %v1012_v48 }
 0x798   : > { %v1015_v50 = vpop.xlane.xlu1 %1014 }
 0x799   : > { %v1018_v51 = vsub.f32 %v3232_v42, %v1016_v49  ;;  %v1017_v0 = vmul.f32 0.03125, %v1015_v50 }
 0x79b   : > { %v1019_v52 = vsub.f32 %v3235_v45, %v1017_v0  ;;  %v1020_v53 = vmul.f32 %v1018_v51, %v1018_v51 }
 0x79d   : > { %v1022_v1 = vsel %vm317_vm0, %v1020_v53, 0.0  ;;  %v1021_v54 = vmul.f32 %v1019_v52, %v1019_v52 }
 0x79e   : > { %1023 = vadd.xlane.f32.xlu0 %v1022_v1 }
 0x79f   : > { %v1025_v56 = vsel %vm317_vm0, %v1021_v54, 0.0 }
 0x7a2   : > { %1026 = vadd.xlane.f32.xlu0 %v1025_v56 }
 0x82b   : > { %v1024_v60 = vpop.xlane.xlu0 %1023 }
 0x82c   : > { %v1028_v61 = vmul.f32 0.03125, %v1024_v60 }
 0x82e   : > { %v1030_v62 = vadd.f32 1e-05, %v1028_v61 }
 0x82f   : > { %v1027_v63 = vpop.xlane.xlu0 %1026 }
 0x830   : > { %v1029_v2 = vmul.f32 0.03125, %v1027_v63  ;;  %2831 = vrsqrt.f32 %v1030_v62 }
 0x832   : > { %v1031_v3 = vadd.f32 1e-05, %v1029_v2  ;;  %v2779_v2 = vld [vmem:[%s3576_s1 + $0x10] sm:$0xff]  }
 0x834   : > { %2833 = vrsqrt.f32 %v1031_v3  ;;  %v2780_v3 = vld [vmem:[%s3576_s1 + $0x18] sm:$0xff]  }
 0x83a   : > { %v2832_v4 = vpop.eup %2831 }
 0x83b   : > { %v1034_v6 = vmul.f32 %v2832_v4, %v1018_v51 }
 0x83e   : > { %v2834_v5 = vpop.eup %2833 }
 0x83f   : > { %v1035_v7 = vmul.f32 %v2834_v5, %v1019_v52 }
 0x841   : > { %v1036_v8 = vpack.c.bf16 %v1035_v7, %v1034_v6 }
 0x843   : > { %2555 = vmatmul.mubr.msk.bf16.vlgmr.msra.gmra.mrb[16].mxu0 %vm317_vm0, %v1036_v8 }
 0x844   : > { %2582 = vmatprep.mubr.msk.bf16.mxu0 %vm2960_vm1, %v2959_v15  ;;  %2579 = vmatpush3.bf16.msra.mxu0 %v2779_v2 }
 0x845   : > { %2580 = vmatprep.subr.bf16.mxu0 %v2959_v15 }
 0x848   : > { %2581 = vmatpush3.bf16.msra.mxu0 %v2780_v3 }
 0x849   : > { %2586 = vmatprep.subr.bf16.mxu0 %v2959_v15 }
 0x916   : > { %v1094_v20 = vpop.f32.mrb[16].mxu0 }
 0x917   : > { %v1095_v21 = vadd.f32 %v1094_v20, %v1044_v19  ;;  %v2556_v22 = vpop.f32.mrb[17].mxu0 }
 0x918   : > { %v1097_v23 = vpop.f32.mrb[18].mxu0 }
 0x919   : > { %v2338_v24 = vmul.f32 -1.702, %v1095_v21  ;;  %v1098_v25 = vadd.f32 %v1097_v23, %v1044_v19  ;;  %v2557_v26 = vpop.f32.mrb[19].mxu0 }
 0x91b   : > { %v1105_v27 = vmul.f32 1.442695, %v2338_v24  ;;  %v2339_v28 = vmul.f32 -1.702, %v1098_v25 }
 0x91d   : > { %2835 = vpow2.f32 %v1105_v27  ;;  %v1107_v32 = vmul.f32 1.442695, %v2339_v28 }
 0x91f   : > { %2837 = vpow2.f32 %v1107_v32 }
 0x927   : > { %v2836_v33 = vpop.eup %2835 }
 0x928   : > { %v1109_v39 = vadd.f32 1.0, %v2836_v33 }
 0x929   : > { %v2838_v34 = vpop.eup %2837 }
 0x92a   : > { %2839 = vrcp.f32 %v1109_v39  ;;  %v1110_v36 = vadd.f32 1.0, %v2838_v34 }
 0x92c   : > { %2841 = vrcp.f32 %v1110_v36 }
 0x934   : > { %v2840_v37 = vpop.eup %2839 }
 0x935   : > { %v1115_v40 = vmul.f32 %v2840_v37, %v1095_v21 }
 0x936   : > { %v2842_v38 = vpop.eup %2841 }
 0x937   : > { %v1116_v41 = vmul.f32 %v2842_v38, %v1098_v25 }
 0x939   : > { %v1117_v43 = vpack.c.bf16 %v1116_v41, %v1115_v40 }
 0x93b   : > { %2575 = vmatmul.mubr.bf16.vlgmr.msra.gmra.mrb[24].mxu1 %v1117_v43 }
 0x93c   : > { %2606 = vmatprep.mubr.msk.bf16.mxu1 %vm2960_vm1, %v2959_v15 }
 0xa0e   : > { %v1220_v47 = vpop.f32.mrb[24].mxu1 }
 0xa0f   : > { %v1221_v48 = vadd.f32 %v1220_v47, %v1137_v46  ;;  %v2576_v49 = vpop.f32.mrb[25].mxu1 }
 0xa10   : > { %v1223_v50 = vpop.f32.mrb[26].mxu1 }
 0xa11   : > { %v3299_v51 = vadd.f32 %v1221_v48, %v3232_v42  ;;  %v1224_v0 = vadd.f32 %v1223_v50, %v1137_v46  ;;  %v2577_v52 = vpop.f32.mrb[27].mxu1 }
 0xa13   : > { %v3302_v53 = vadd.f32 %v1224_v0, %v3235_v45  ;;  %v1231_v1 = vsel %vm317_vm0, %v3299_v51, 0.0 }
 0xa14   : > { %1232 = vadd.xlane.f32.xlu0 %v1231_v1 }
 0xa15   : > { %v1234_v54 = vsel %vm317_vm0, %v3302_v53, 0.0 }
 0xa16   : > { %1235 = vadd.xlane.f32.xlu1 %v1234_v54 }
 0xaa1   : > { %v1233_v31 = vpop.xlane.xlu0 %1232 }
 0xaa2   : > { %v1237_v56 = vmul.f32 0.03125, %v1233_v31 }
 0xaa3   : > { %v1236_v57 = vpop.xlane.xlu1 %1235 }
 0xaa4   : > { %v1239_v58 = vsub.f32 %v3299_v51, %v1237_v56  ;;  %v1238_v42 = vmul.f32 0.03125, %v1236_v57 }
 0xaa6   : > { %v1240_v60 = vsub.f32 %v3302_v53, %v1238_v42  ;;  %v1241_v61 = vmul.f32 %v1239_v58, %v1239_v58 }
 0xaa8   : > { %v1243_v45 = vsel %vm317_vm0, %v1241_v61, 0.0  ;;  %v1242_v62 = vmul.f32 %v1240_v60, %v1240_v60 }
 0xaa9   : > { %1244 = vadd.xlane.f32.xlu0 %v1243_v45 }
 0xaaa   : > { %v1246_v63 = vsel %vm317_vm0, %v1242_v62, 0.0 }
 0xaab   : > { %1247 = vadd.xlane.f32.xlu1 %v1246_v63 }
 0xb36   : > { %v1245_v4 = vpop.xlane.xlu0 %1244 }
 0xb37   : > { %v1249_v5 = vmul.f32 0.03125, %v1245_v4 }
 0xb38   : > { %v1248_v6 = vpop.xlane.xlu1 %1247 }
 0xb39   : > { %v1251_v7 = vadd.f32 1e-05, %v1249_v5  ;;  %v1250_v8 = vmul.f32 0.03125, %v1248_v6 }
 0xb3b   : > { %2843 = vrsqrt.f32 %v1251_v7  ;;  %v1252_v9 = vadd.f32 1e-05, %v1250_v8 }
 0xb3d   : > { %2845 = vrsqrt.f32 %v1252_v9 }
 0xb45   : > { %v2844_v10 = vpop.eup %2843 }
 0xb46   : > { %v1255_v12 = vmul.f32 %v2844_v10, %v1239_v58 }
 0xb47   : > { %v2846_v11 = vpop.eup %2845 }
 0xb48   : > { %v1256_v13 = vmul.f32 %v2846_v11, %v1240_v60 }
 0xb4a   : > { %v1257_v14 = vpack.c.bf16 %v1256_v13, %v1255_v12 }
 0xb4c   : > { %2583 = vmatmul.mubr.msk.bf16.vlgmr.msra.gmra.mrb[20].mxu0 %vm317_vm0, %v1257_v14 }
 0xb4d   : > { %2588 = vmatprep.mubr.msk.bf16.mxu0 %vm2960_vm1, %v2959_v15 }
 0xc1f   : > { %v1316_v19 = vpop.f32.mrb[20].mxu0 }
 0xc20   : > { %v2584_v20 = vpop.f32.mrb[21].mxu0  ;;  %v1317_v22 = vadd.f32 %v1316_v19, %v1266_v17 }
 0xc21   : > { %v1319_v21 = vpop.f32.mrb[22].mxu0 }
 0xc22   : > { %v1320_v23 = vadd.f32 %v1319_v21, %v1266_v17  ;;  %v2585_v24 = vpop.f32.mrb[23].mxu0 }
 0xc24   : > { %v3331_v25 = vpack.c.bf16 %v1320_v23, %v1317_v22 }
 0xc26   : > { %1325 = vrot.lane.b32.xlu0 %v3331_v25, %s2962_s13  ;;  %s3596_s13 = smov 104  }
 0xc2a   : > { %1450 = vrot.lane.b32.xlu0 %v3331_v25, %s2961_s12  ;;  %s3595_s12 = smov 112  }
 0xc2e   : > { %1448 = vrot.lane.b32.xlu0 %v3331_v25, %s2963_s17  ;;  %s3597_s17 = smov 48  }
 0xc32   : > { %1575 = vrot.lane.b32.xlu0 %v3331_v25, %s2965_s19  ;;  %s3598_s19 = smov 56  }
 0xc36   : > { %1700 = vrot.lane.b32.xlu0 %v3331_v25, %s2967_s21  ;;  %s3599_s21 = smov 40  }
 0xc98   : > { %v1326_v30 = vpop.permute.xlu0 %1325 }
 0xc99   : > { %v1331_v26 = vsel %vm414_vm2, %v1326_v30, 0 }
 0xc9a   : > { %2587 = vmatpush3.bf16.xpose.msra.mxu0 %v1331_v26 }
 0xc9b   : > { %2592 = vmatprep.subr.bf16.mxu0 %v2959_v15 }
 0xc9c   : > { %v1451_v58 = vpop.permute.xlu0 %1450 }
 0xc9d   : > { %v1456_v63 = vsel %vm414_vm2, %v1451_v58, 0 }
 0xca0   : > { %v1449_v62 = vpop.permute.xlu0 %1448 }
 0xca1   : > { %2589 = vmatmul.mubr.msk.bf16.vlgmr.msra.gmra.mrb[24].mxu0 %vm414_vm2, %v3331_v25 }
 0xca2   : > { %2594 = vmatprep.mubr.msk.bf16.mxu0 %vm2960_vm1, %v2959_v15 }
 0xca4   : > { %v1576_v2 = vpop.permute.xlu0 %1575 }
 0xca5   : > { %v1581_v3 = vsel %vm414_vm2, %v1576_v2, 0 }
 0xca8   : > { %v1701_v4 = vpop.permute.xlu0 %1700 }
 0xca9   : > { %v1706_v6 = vsel %vm414_vm2, %v1701_v4, 0 }
 0xd74   : > { %v1367_v27 = vpop.f32.mrb[24].mxu0 }
 0xd75   : > { %v1374_v28 = vmul.f32 0.35355338, %v1367_v27  ;;  %v2590_v32 = vpop.f32.mrb[25].mxu0 }
 0xd76   : > { %v1370_v33 = vpop.f32.mrb[26].mxu0 }
 0xd77   : > { %v1375_v39 = vmul.f32 0.35355338, %v1370_v33  ;;  %v2591_v34 = vpop.f32.mrb[27].mxu0  ;;  %v1376_v36 = vadd.f32 %v1374_v28, %v3155_v55 }
 0xd79   : > { %v1378_v37 = vsel %vm466_vm5, %v1376_v36, -inf  ;;  %v1377_v38 = vadd.f32 %v1375_v39, %v3157_v59 }
 0xd7a   : > { %1379 = vmax.xlane.f32.xlu1 %v1378_v37 }
 0xd7b   : > { %v1381_v40 = vsel %vm466_vm5, %v1377_v38, -inf }
 0xd7e   : > { %1382 = vmax.xlane.f32.xlu1 %v1381_v40 }
 0xe07   : > { %v1380_v41 = vpop.xlane.xlu1 %1379 }
 0xe08   : > { %v1384_v43 = vsub.f32 %v1376_v36, %v1380_v41 }
 0xe0a   : > { %v1386_v46 = vmul.f32 1.442695, %v1384_v43 }
 0xe0b   : > { %v1383_v47 = vpop.xlane.xlu1 %1382 }
 0xe0c   : > { %2847 = vpow2.f32 %v1386_v46  ;;  %v1385_v48 = vsub.f32 %v1377_v38, %v1383_v47 }
 0xe0e   : > { %v1388_v49 = vmul.f32 1.442695, %v1385_v48 }
 0xe10   : > { %2849 = vpow2.f32 %v1388_v49 }
 0xe16   : > { %v2848_v50 = vpop.eup %2847 }
 0xe17   : > { %v1390_v0 = vsel %vm466_vm5, %v2848_v50, 0.0 }
 0xe18   : > { %1391 = vadd.xlane.f32.xlu1 %v1390_v0 }
 0xe1a   : > { %v2850_v52 = vpop.eup %2849 }
 0xe1b   : > { %v1393_v1 = vsel %vm466_vm5, %v2850_v52, 0.0 }
 0xe1c   : > { %1394 = vadd.xlane.f32.xlu1 %v1393_v1 }
 0xe2d   : > { %1401 = vrot.lane.b32.xlu1 %v3331_v25, %s2969_s22  ;;  %s2414_s22 = sshll.u32 %s3044_s9, 8 }
 0xe2e   : > { %s3531_s20 = scalar_lea.hbm %s3583_s8, %s2414_s22 }
 0xe31   : > { %1573 = vrot.lane.b32.xlu1 %v3331_v25, %s3595_s12  ;;  %s2318_s12 = sshll.u32 %s296_s26, 4 }
 0xe35   : > { %1698 = vrot.lane.b32.xlu1 %v3331_v25, %s3596_s13 }
 0xea5   : > { %v1392_v54 = vpop.xlane.xlu1 %1391 }
 0xea6   : > { %2851 = vrcp.f32 %v1392_v54 }
 0xea9   : > { %v1395_v31 = vpop.xlane.xlu1 %1394 }
 0xeaa   : > { %2853 = vrcp.f32 %v1395_v31 }
 0xead   : > { %v1402_v56 = vpop.permute.xlu1 %1401 }
 0xeae   : > { %2593 = vmatpush3.bf16.msra.mxu0 %v1402_v56 }
 0xeaf   : > { %2598 = vmatprep.subr.bf16.mxu0 %v2959_v15 }
 0xeb0   : > { %v2852_v57 = vpop.eup %2851 }
 0xeb1   : > { %v1398_v60 = vmul.f32 %v2852_v57, %v2848_v50  ;;  %v1574_v5 = vpop.permute.xlu1 %1573 }
 0xeb4   : > { %v2854_v42 = vpop.eup %2853 }
 0xeb5   : > { %v1399_v61 = vmul.f32 %v2854_v42, %v2850_v52  ;;  %v1699_v7 = vpop.permute.xlu1 %1698 }
 0xeb7   : > { %v1400_v45 = vpack.c.bf16 %v1399_v61, %v1398_v60 }
 0xeb9   : > { %2595 = vmatmul.mubr.msk.bf16.vlgmr.msra.gmra.mrb[28].mxu0 %vm466_vm5, %v1400_v45 }
 0xeba   : > { %2599 = vmatpush3.bf16.xpose.msra.mxu0 %v1456_v63  ;;  %2600 = vmatprep.mubr.msk.bf16.mxu0 %vm2960_vm1, %v2959_v15 }
 0xebb   : > { %2610 = vmatprep.subr.bf16.mxu0 %v2959_v15 }
 0xec1   : > { %2601 = vmatmul.mubr.msk.bf16.vlgmr.msra.gmra.mrb[32].mxu0 %vm414_vm2, %v1449_v62 }
 0xec2   : > { %2611 = vmatpush3.bf16.xpose.msra.mxu0 %v1581_v3  ;;  %2612 = vmatprep.mubr.msk.bf16.mxu0 %vm2960_vm1, %v2959_v15 }
 0xec3   : > { %2622 = vmatprep.subr.bf16.mxu0 %v2959_v15 }
 0xec9   : > { %2613 = vmatmul.mubr.msk.bf16.vlgmr.msra.gmra.mrb[36].mxu0 %vm414_vm2, %v1574_v5 }
 0xeca   : > { %2623 = vmatpush3.bf16.xpose.msra.mxu0 %v1706_v6  ;;  %2624 = vmatprep.mubr.msk.bf16.mxu0 %vm2960_vm1, %v2959_v15 }
 0xecb   : > { %2634 = vmatprep.subr.bf16.mxu0 %v2959_v15 }
 0xed1   : > { %2625 = vmatmul.mubr.msk.bf16.vlgmr.msra.gmra.mrb[40].mxu0 %vm414_vm2, %v1699_v7 }
 0xed2   : > { %2638 = vmatprep.mubr.msk.bf16.mxu0 %vm2960_vm1, %v2959_v15 }
 0xf8c   : > { %v3380_v8 = vpop.f32.mrb[28].mxu0 }
 0xf8d   : > { %v2596_v9 = vpop.f32.mrb[29].mxu0 }
 0xf8e   : > { %v3382_v10 = vpop.f32.mrb[30].mxu0 }
 0xf8f   : > { %v2597_v11 = vpop.f32.mrb[31].mxu0 }
 0xf94   : > { %v1492_v12 = vpop.f32.mrb[32].mxu0 }
 0xf95   : > { %v1499_v13 = vmul.f32 0.35355338, %v1492_v12  ;;  %v2602_v14 = vpop.f32.mrb[33].mxu0 }
 0xf96   : > { %v1495_v17 = vpop.f32.mrb[34].mxu0 }
 0xf97   : > { %v1500_v19 = vmul.f32 0.35355338, %v1495_v17  ;;  %v2603_v20 = vpop.f32.mrb[35].mxu0  ;;  %v1501_v21 = vadd.f32 %v1499_v13, %v3155_v55 }
 0xf99   : > { %v1503_v22 = vsel %vm466_vm5, %v1501_v21, -inf  ;;  %v1502_v23 = vadd.f32 %v1500_v19, %v3157_v59 }
 0xf9a   : > { %1504 = vmax.xlane.f32.xlu0 %v1503_v22 }
 0xf9b   : > { %v1506_v24 = vsel %vm466_vm5, %v1502_v23, -inf }
 0xf9c   : > { %1507 = vmax.xlane.f32.xlu1 %v1506_v24  ;;  %v1617_v30 = vpop.f32.mrb[36].mxu0 }
 0xf9d   : > { %v1624_v26 = vmul.f32 0.35355338, %v1617_v30  ;;  %v2614_v27 = vpop.f32.mrb[37].mxu0 }
 0xf9e   : > { %v1620_v28 = vpop.f32.mrb[38].mxu0 }
 0xf9f   : > { %v1625_v32 = vmul.f32 0.35355338, %v1620_v28  ;;  %v2615_v33 = vpop.f32.mrb[39].mxu0  ;;  %v1626_v39 = vadd.f32 %v1624_v26, %v3155_v55 }
 0xfa1   : > { %v1628_v34 = vsel %vm466_vm5, %v1626_v39, -inf  ;;  %v1627_v36 = vadd.f32 %v1625_v32, %v3157_v59 }
 0xfa2   : > { %1629 = vmax.xlane.f32.xlu0 %v1628_v34 }
 0xfa3   : > { %v1631_v41 = vsel %vm466_vm5, %v1627_v36, -inf }
 0xfa4   : > { %v1742_v37 = vpop.f32.mrb[40].mxu0 }
 0xfa5   : > { %v1749_v38 = vmul.f32 0.35355338, %v1742_v37  ;;  %v2626_v40 = vpop.f32.mrb[41].mxu0 }
 0xfa6   : > { %1632 = vmax.xlane.f32.xlu0 %v1631_v41  ;;  %v1745_v43 = vpop.f32.mrb[42].mxu0 }
 0xfa7   : > { %v1750_v46 = vmul.f32 0.35355338, %v1745_v43  ;;  %v2627_v47 = vpop.f32.mrb[43].mxu0  ;;  %v1751_v48 = vadd.f32 %v1749_v38, %v3155_v55 }
 0xfa9   : > { %v1753_v49 = vsel %vm466_vm5, %v1751_v48, -inf  ;;  %v1752_v50 = vadd.f32 %v1750_v46, %v3157_v59 }
 0xfaa   : > { %1754 = vmax.xlane.f32.xlu0 %v1753_v49 }
 0xfab   : > { %v1756_v0 = vsel %vm466_vm5, %v1752_v50, -inf }
 0xfac   : > { %1757 = vmax.xlane.f32.xlu1 %v1756_v0 }
0x1027   : > { %v1505_v52 = vpop.xlane.xlu0 %1504 }
0x1028   : > { %v1509_v1 = vsub.f32 %v1501_v21, %v1505_v52 }
0x1029   : > { %v1508_v54 = vpop.xlane.xlu1 %1507 }
0x102a   : > { %v1511_v31 = vmul.f32 1.442695, %v1509_v1  ;;  %v1510_v56 = vsub.f32 %v1502_v23, %v1508_v54 }
0x102c   : > { %2855 = vpow2.f32 %v1511_v31  ;;  %v1513_v57 = vmul.f32 1.442695, %v1510_v56  ;;  %v2781_v31 = vld [vmem:[%s3577_s2 + $0x10] sm:$0xff]  }
0x102d   : > { %2635 = vmatpush3.bf16.msra.mxu0 %v2781_v31 }
0x102e   : > { %2857 = vpow2.f32 %v1513_v57  ;;  %2636 = vmatprep.subr.bf16.mxu0 %v2959_v15 }
0x102f   : > { %v1630_v58 = vpop.xlane.xlu0 %1629 }
0x1030   : > { %v1634_v42 = vsub.f32 %v1626_v39, %v1630_v58 }
0x1032   : > { %v1636_v60 = vmul.f32 1.442695, %v1634_v42 }
0x1033   : > { %v1633_v55 = vpop.xlane.xlu0 %1632 }
0x1034   : > { %2859 = vpow2.f32 %v1636_v60  ;;  %v1635_v61 = vsub.f32 %v1627_v36, %v1633_v55 }
0x1036   : > { %v2856_v45 = vpop.eup %2855  ;;  %v1638_v59 = vmul.f32 1.442695, %v1635_v61 }
0x1037   : > { %v1755_v62 = vpop.xlane.xlu0 %1754  ;;  %v1515_v63 = vsel %vm466_vm5, %v2856_v45, 0.0 }
0x1038   : > { %v2858_v2 = vpop.eup %2857  ;;  %2861 = vpow2.f32 %v1638_v59  ;;  %v1759_v3 = vsub.f32 %v1751_v48, %v1755_v62  ;;  %1516 = vadd.xlane.f32.xlu0 %v1515_v63 }
0x1039   : > { %v1518_v4 = vsel %vm466_vm5, %v2858_v2, 0.0  ;;  %v1758_v14 = vpop.xlane.xlu1 %1757 }
0x103a   : > { %v1761_v5 = vmul.f32 1.442695, %v1759_v3  ;;  %1519 = vadd.xlane.f32.xlu1 %v1518_v4  ;;  %v1760_v17 = vsub.f32 %v1752_v50, %v1758_v14 }
0x103c   : > { %2863 = vpow2.f32 %v1761_v5  ;;  %v1763_v19 = vmul.f32 1.442695, %v1760_v17 }
0x103e   : > { %v2860_v6 = vpop.eup %2859  ;;  %2865 = vpow2.f32 %v1763_v19 }
0x103f   : > { %v1640_v7 = vsel %vm466_vm5, %v2860_v6, 0.0 }
0x1040   : > { %1641 = vadd.xlane.f32.xlu0 %v1640_v7 }
0x1042   : > { %v2862_v9 = vpop.eup %2861 }
0x1043   : > { %v1643_v11 = vsel %vm466_vm5, %v2862_v9, 0.0 }
0x1044   : > { %1644 = vadd.xlane.f32.xlu1 %v1643_v11 }
0x1046   : > { %v2864_v12 = vpop.eup %2863 }
0x1047   : > { %v1765_v13 = vsel %vm466_vm5, %v2864_v12, 0.0 }
0x1048   : > { %1766 = vadd.xlane.f32.xlu0 %v1765_v13  ;;  %v2866_v20 = vpop.eup %2865 }
0x1049   : > { %v1768_v21 = vsel %vm466_vm5, %v2866_v20, 0.0 }
0x1055   : > { %1651 = vrot.lane.b32.xlu1 %v3331_v25, %s3597_s17 }
0x105e   : > { %1526 = vrot.lane.b32.xlu0 %v3331_v25, %s3598_s19  ;;  %s298_s19 = scalar_lea.vmem [#allocation2], %s2318_s12 }
0x1079   : > { %1769 = vadd.xlane.f32.xlu1 %v1768_v21 }
0x108a   : > { %1776 = vrot.lane.b32.xlu1 %v3331_v25, %s3599_s21  ;;  %s2252_s21 = sshll.u32 %s298_s19, 4  ;;  %s3526_s21 = int_to_ptr.vmem [resolvable:$true] %s2252_s21 }
0x108b   : > { %s2895_s9 = scalar_lea.vmem %s3526_s21, 256 }
0x108c   : > { %p2896_p11 = scmp.ne.s32.totalorder %s3526_s21, %s2895_s9 }
0x108e   : > { %p2897_p12 = pnand %p2896_p11, %p3061_p5 }
0x1090   : > { %p2898_p13 = pneg %p2897_p12 }
0x10c5   : > { %v1517_v23 = vpop.xlane.xlu0 %1516 }
0x10c7   : > { %v1520_v22 = vpop.xlane.xlu1 %1519 }
0x10c8   : > { %2867 = vrcp.f32 %v1520_v22 }
0x10c9   : > { %2869 = vrcp.f32 %v1517_v23 }
0x10cd   : > { %v1642_v24 = vpop.xlane.xlu0 %1641 }
0x10d1   : > { %v1645_v30 = vpop.xlane.xlu1 %1644 }
0x10d2   : > { %2871 = vrcp.f32 %v1645_v30  ;;  %v2868_v26 = vpop.eup %2867 }
0x10d3   : > { %2873 = vrcp.f32 %v1642_v24  ;;  %v2870_v28 = vpop.eup %2869  ;;  %v1524_v32 = vmul.f32 %v2868_v26, %v2858_v2 }
0x10d4   : > { %v1523_v33 = vmul.f32 %v2870_v28, %v2856_v45  ;;  %v2782_v45 = vld [vmem:[%s3577_s2 + $0x18] sm:$0xff]  }
0x10d5   : > { %v1767_v27 = vpop.xlane.xlu0 %1766  ;;  %v1652_v25 = vpop.permute.xlu1 %1651  ;;  %2637 = vmatpush3.bf16.msra.mxu0 %v2782_v45  ;;  %v2788_v45 = vld [vmem:[%s3579_s4 + $0x58] sm:$0xff]  }
0x10d6   : > { %v1525_v34 = vpack.c.bf16 %v1524_v32, %v1523_v33  ;;  %2875 = vrcp.f32 %v1767_v27  ;;  %2650 = vmatprep.subr.bf16.mxu0 %v2959_v15 }
0x10d9   : > { %v1527_v39 = vpop.permute.xlu0 %1526 }
0x10da   : > { %2605 = vmatpush3.bf16.msra.mxu1 %v1527_v39 }
0x10db   : > { %2616 = vmatprep.subr.bf16.mxu1 %v2959_v15 }
0x10dc   : > { %v2872_v36 = vpop.eup %2871 }
0x10dd   : > { %2607 = vmatmul.mubr.msk.bf16.vlgmr.msra.gmra.mrb[28].mxu1 %vm466_vm5, %v1525_v34  ;;  %v2874_v37 = vpop.eup %2873  ;;  %v1649_v38 = vmul.f32 %v2872_v36, %v2862_v9 }
0x10de   : > { %2617 = vmatpush3.bf16.msra.mxu1 %v1652_v25  ;;  %2618 = vmatprep.mubr.msk.bf16.mxu1 %vm2960_vm1, %v2959_v15  ;;  %v1648_v40 = vmul.f32 %v2874_v37, %v2860_v6 }
0x10df   : > { %2628 = vmatprep.subr.bf16.mxu1 %v2959_v15 }
0x10e0   : > { %v1650_v41 = vpack.c.bf16 %v1649_v38, %v1648_v40  ;;  %v2876_v47 = vpop.eup %2875 }
0x10e1   : > { %v1773_v49 = vmul.f32 %v2876_v47, %v2864_v12  ;;  %v2783_v47 = vld [vmem:[%s3578_s3 + $0x10] sm:$0xff]  }
0x10e5   : > { %2619 = vmatmul.mubr.msk.bf16.vlgmr.msra.gmra.mrb[32].mxu1 %vm466_vm5, %v1650_v41 }
0x10e6   : > { %2630 = vmatprep.mubr.msk.bf16.mxu1 %vm2960_vm1, %v2959_v15 }
0x1106   : > { %v1770_v43 = vpop.xlane.xlu1 %1769 }
0x1107   : > { %2877 = vrcp.f32 %v1770_v43 }
0x110a   : > { %v1777_v46 = vpop.permute.xlu1 %1776 }
0x110b   : > { %2629 = vmatpush3.bf16.msra.mxu1 %v1777_v46 }
0x110c   : > { %2642 = vmatprep.subr.bf16.mxu1 %v2959_v15 }
0x1111   : > { %v2878_v48 = vpop.eup %2877 }
0x1112   : > { %v1774_v50 = vmul.f32 %v2878_v48, %v2866_v20  ;;  %v2784_v48 = vld [vmem:[%s3578_s3 + $0x18] sm:$0xff]  }
0x1114   : > { %v1775_v0 = vpack.c.bf16 %v1774_v50, %v1773_v49 }
0x1116   : > { %2631 = vmatmul.mubr.msk.bf16.vlgmr.msra.gmra.mrb[36].mxu1 %vm466_vm5, %v1775_v0 }
0x1117   : > { %2646 = vmatprep.mubr.msk.bf16.mxu1 %vm2960_vm1, %v2959_v15  ;;  %2643 = vmatpush3.bf16.msra.mxu1 %v2783_v47  ;;  %v2794_v47 = vld [vmem:[%s3581_s6 + $0x8] sm:$0xff]  }
0x1118   : > { %2644 = vmatprep.subr.bf16.mxu1 %v2959_v15 }
0x111b   : > { %2645 = vmatpush3.bf16.msra.mxu1 %v2784_v48 }
0x111c   : > { %2670 = vmatprep.subr.bf16.mxu1 %v2959_v15 }
0x11b0   : > { %v1566_v52 = vpop.f32.mrb[28].mxu1 }
0x11b1   : > { %v2608_v1 = vpop.f32.mrb[29].mxu1 }
0x11b2   : > { %v1569_v54 = vpop.f32.mrb[30].mxu1 }
0x11b3   : > { %v2750_v56 = vpack.i.bf16 %v1569_v54, %v1566_v52  ;;  %v2609_v57 = vpop.f32.mrb[31].mxu1 }
0x11b5   : > { %2751 = vrot.lane.b32.xlu1 %v2750_v56, %s3600_s23 }
0x11b8   : > { %v1691_v58 = vpop.f32.mrb[32].mxu1 }
0x11b9   : > { %v2620_v42 = vpop.f32.mrb[33].mxu1 }
0x11ba   : > { %v1694_v60 = vpop.f32.mrb[34].mxu1 }
0x11bb   : > { %v2755_v55 = vpack.i.bf16 %v1694_v60, %v1691_v58  ;;  %v2621_v61 = vpop.f32.mrb[35].mxu1  ;;  %v2785_v60 = vld [vmem:[%s3579_s4 + $0x40] sm:$0xff]  }
0x11bc   : > { %v2787_v61 = vld [vmem:[%s3579_s4 + $0x50] sm:$0xff]  }
0x11bd   : > { %2756 = vrot.lane.b32.xlu0 %v2755_v55, %s3601_s25  ;;  %v2786_v55 = vld [vmem:[%s3579_s4 + $0x48] sm:$0xff]  }
0x11e9   : > { %v1816_v59 = vpop.f32.mrb[36].mxu1 }
0x11ea   : > { %v2632_v62 = vpop.f32.mrb[37].mxu1 }
0x11eb   : > { %v1819_v63 = vpop.f32.mrb[38].mxu1  ;;  %v2790_v62 = vld [vmem:[%s3579_s4 + $0x68] sm:$0xff]  }
0x11ec   : > { %v2760_v2 = vpack.i.bf16 %v1819_v63, %v1816_v59  ;;  %v2633_v3 = vpop.f32.mrb[39].mxu1  ;;  %v2789_v59 = vld [vmem:[%s3579_s4 + $0x60] sm:$0xff]   ;;  %v2791_v63 = vld [vmem:[%s3579_s4 + $0x70] sm:$0xff]  }
0x11ed   : > { %v1956_v3 = vrot.slane %v3326_v16, %v1043_v18 }
0x11ee   : > { %2761 = vrot.lane.b32.xlu1 %v2760_v2, %s3602_s18  ;;  %v2792_v2 = vld [vmem:[%s3579_s4 + $0x78] sm:$0xff]   ;;  %s2976_s18 = smov [#allocation2]  }
0x11ef   : > { %s2899_s12 = sshll.u32 %s2976_s18, 4  ;;  %s2900_s12 = int_to_ptr.vmem [resolvable:$false] %s2899_s12 }
0x11f0   : > { %s2901_s13 = scalar_lea.vmem %s2900_s12, 512  ;;  %p2902_p0 = scmp.lt.s32.totalorder %s3526_s21, %s2900_s12 }
0x11f1   : > { %p2903_p1 = scmp.lt.s32.totalorder %s2901_s13, %s2895_s9 }
0x11f3   : > { %p2904_p2 = por %p2903_p1, %p2902_p0 }
0x11f5   : > { %p2905_p3 = pnand %p2904_p2, %p2898_p13 }
0x1227   : > { %v2752_v4 = vpop.permute.xlu1 %2751 }
0x1228   : > { %v2754_v6 = vunpack.i.h.bf16 %v2752_v4  ;;  %v2753_v7 = vunpack.i.l.bf16 %v2752_v4 }
0x122a   : > { %v1848_v13 = vsel %vm414_vm2, %v3382_v10, %v2754_v6  ;;  %v1847_v14 = vsel %vm414_vm2, %v3380_v8, %v2753_v7  ;;  %v1862_v8 = vrot.slane %v3326_v16, %v950_v35 }
0x122f   : > { %v2757_v5 = vpop.permute.xlu0 %2756 }
0x1230   : > { %v2759_v9 = vunpack.i.h.bf16 %v2757_v5  ;;  %v2758_v11 = vunpack.i.l.bf16 %v2757_v5 }
0x1232   : > { %v1850_v20 = vsel %vm466_vm5, %v1848_v13, %v2759_v9  ;;  %v1849_v21 = vsel %vm466_vm5, %v1847_v14, %v2758_v11 }
0x1260   : > { %v2762_v12 = vpop.permute.xlu1 %2761 }
0x1261   : > { %v2764_v17 = vunpack.i.h.bf16 %v2762_v12  ;;  %v2763_v19 = vunpack.i.l.bf16 %v2762_v12 }
0x1263   : > { %v1852_v22 = vsel %vm940_vm6, %v1850_v20, %v2764_v17  ;;  %v1851_v23 = vsel %vm940_vm6, %v1849_v21, %v2763_v19 }
0x1264   : > { %v1853_v24 = vpack.c.bf16 %v1852_v22, %v1851_v23 }
0x1266   : > { %2639 = vmatmul.mubr.msk.bf16.vlgmr.msra.gmra.mrb[44].mxu0 %vm317_vm0, %v1853_v24 }
0x1267   : > { %2666 = vmatprep.mubr.msk.bf16.mxu0 %vm2960_vm1, %v2959_v15  ;;  %2651 = vmatpush3.bf16.msra.mxu0 %v2785_v60 }
0x1268   : > { %2652 = vmatprep.subr.bf16.mxu0 %v2959_v15 }
0x126b   : > { %2653 = vmatpush3.bf16.msra.mxu0 %v2786_v55 }
0x126c   : > { %2654 = vmatprep.subr.bf16.mxu0 %v2959_v15 }
0x126f   : > { %2655 = vmatpush3.bf16.msra.mxu0 %v2787_v61 }
0x1270   : > { %2656 = vmatprep.subr.bf16.mxu0 %v2959_v15 }
0x1273   : > { %2657 = vmatpush3.bf16.msra.mxu0 %v2788_v45 }
0x1274   : > { %2658 = vmatprep.subr.bf16.mxu0 %v2959_v15 }
0x1277   : > { %2659 = vmatpush3.bf16.msra.mxu0 %v2789_v59 }
0x1278   : > { %2660 = vmatprep.subr.bf16.mxu0 %v2959_v15 }
0x127b   : > { %2661 = vmatpush3.bf16.msra.mxu0 %v2790_v62 }
0x127c   : > { %2662 = vmatprep.subr.bf16.mxu0 %v2959_v15 }
0x127f   : > { %2663 = vmatpush3.bf16.msra.mxu0 %v2791_v63 }
0x1280   : > { %2664 = vmatprep.subr.bf16.mxu0 %v2959_v15 }
0x1283   : > { %2665 = vmatpush3.bf16.msra.mxu0 %v2792_v2 }
0x1339   : > { %v1912_v10 = vpop.f32.mrb[44].mxu0 }
0x133a   : > { %v1913_v30 = vadd.f32 %v1912_v10, %v1862_v8  ;;  %v2640_v26 = vpop.f32.mrb[45].mxu0 }
0x133b   : > { %v1915_v27 = vpop.f32.mrb[46].mxu0 }
0x133c   : > { %v3446_v28 = vadd.f32 %v1913_v30, %v3299_v51  ;;  %v1916_v32 = vadd.f32 %v1915_v27, %v1862_v8  ;;  %v2641_v33 = vpop.f32.mrb[47].mxu0  ;;  %v2050_v30 = vrot.slane %v3326_v16, %v1136_v44 }
0x133e   : > { %v3449_v39 = vadd.f32 %v1916_v32, %v3302_v53  ;;  %v1921_v34 = vsel %vm317_vm0, %v3446_v28, 0.0 }
0x133f   : > { %1922 = vadd.xlane.f32.xlu0 %v1921_v34 }
0x1340   : > { %v1924_v36 = vsel %vm317_vm0, %v3449_v39, 0.0 }
0x1341   : > { %1925 = vadd.xlane.f32.xlu1 %v1924_v36 }
0x13cc   : > { %v1923_v35 = vpop.xlane.xlu0 %1922 }
0x13cd   : > { %v1927_v25 = vmul.f32 0.03125, %v1923_v35 }
0x13ce   : > { %v1926_v37 = vpop.xlane.xlu1 %1925 }
0x13cf   : > { %v1929_v38 = vsub.f32 %v3446_v28, %v1927_v25  ;;  %v1928_v51 = vmul.f32 0.03125, %v1926_v37 }
0x13d1   : > { %v1930_v40 = vsub.f32 %v3449_v39, %v1928_v51  ;;  %v1931_v41 = vmul.f32 %v1929_v38, %v1929_v38 }
0x13d3   : > { %v1933_v53 = vsel %vm317_vm0, %v1931_v41, 0.0  ;;  %v1932_v43 = vmul.f32 %v1930_v40, %v1930_v40 }
0x13d4   : > { %1934 = vadd.xlane.f32.xlu0 %v1933_v53 }
0x13d5   : > { %v1936_v46 = vsel %vm317_vm0, %v1932_v43, 0.0 }
0x13d8   : > { %1937 = vadd.xlane.f32.xlu0 %v1936_v46 }
0x1461   : > { %v1935_v49 = vpop.xlane.xlu0 %1934 }
0x1462   : > { %v1939_v50 = vmul.f32 0.03125, %v1935_v49 }
0x1464   : > { %v1941_v0 = vadd.f32 1e-05, %v1939_v50 }
0x1465   : > { %v1938_v52 = vpop.xlane.xlu0 %1937 }
0x1466   : > { %v1940_v1 = vmul.f32 0.03125, %v1938_v52  ;;  %2879 = vrsqrt.f32 %v1941_v0 }
0x1468   : > { %v1942_v54 = vadd.f32 1e-05, %v1940_v1 }
0x146a   : > { %2881 = vrsqrt.f32 %v1942_v54 }
0x1470   : > { %v2880_v31 = vpop.eup %2879 }
0x1471   : > { %v1945_v57 = vmul.f32 %v2880_v31, %v1929_v38 }
0x1474   : > { %v2882_v56 = vpop.eup %2881 }
0x1475   : > { %v1946_v58 = vmul.f32 %v2882_v56, %v1930_v40 }
0x1477   : > { %v1947_v42 = vpack.c.bf16 %v1946_v58, %v1945_v57  ;;  %v2404_v58 = vld [vmem:[%s3582_s7] ss:$0 sm:$0xff] }
0x1479   : > { %2647 = vmatmul.mubr.msk.bf16.vlgmr.msra.gmra.mrb[40].mxu1 %vm317_vm0, %v1947_v42 }
0x147a   : > { %2674 = vmatprep.mubr.msk.bf16.mxu1 %vm2960_vm1, %v2959_v15 }
0x154c   : > { %v2006_v4 = vpop.f32.mrb[40].mxu1 }
0x154d   : > { %v2007_v5 = vadd.f32 %v2006_v4, %v1956_v3  ;;  %v2648_v6 = vpop.f32.mrb[41].mxu1 }
0x154e   : > { %v2009_v7 = vpop.f32.mrb[42].mxu1 }
0x154f   : > { %v2378_v9 = vmul.f32 -1.702, %v2007_v5  ;;  %v2010_v11 = vadd.f32 %v2009_v7, %v1956_v3  ;;  %v2649_v12 = vpop.f32.mrb[43].mxu1 }
0x1551   : > { %v2017_v13 = vmul.f32 1.442695, %v2378_v9  ;;  %v2379_v14 = vmul.f32 -1.702, %v2010_v11 }
0x1553   : > { %2883 = vpow2.f32 %v2017_v13  ;;  %v2019_v17 = vmul.f32 1.442695, %v2379_v14 }
0x1555   : > { %2885 = vpow2.f32 %v2019_v17 }
0x155d   : > { %v2884_v19 = vpop.eup %2883 }
0x155e   : > { %v2021_v20 = vadd.f32 1.0, %v2884_v19 }
0x155f   : > { %v2886_v21 = vpop.eup %2885 }
0x1560   : > { %2887 = vrcp.f32 %v2021_v20  ;;  %v2022_v22 = vadd.f32 1.0, %v2886_v21 }
0x1562   : > { %2889 = vrcp.f32 %v2022_v22 }
0x156a   : > { %v2888_v23 = vpop.eup %2887 }
0x156b   : > { %v2027_v24 = vmul.f32 %v2888_v23, %v2007_v5 }
0x156c   : > { %v2890_v18 = vpop.eup %2889 }
0x156d   : > { %v2028_v8 = vmul.f32 %v2890_v18, %v2010_v11 }
0x156f   : > { %v2029_v10 = vpack.c.bf16 %v2028_v8, %v2027_v24 }
0x1571   : > { %2667 = vmatmul.mubr.bf16.vlgmr.msra.gmra.mrb[48].mxu0 %v2029_v10 }
0x1644   : > { %v2133_v26 = vpop.f32.mrb[48].mxu0 }
0x1645   : > { %v2134_v27 = vadd.f32 %v2133_v26, %v2050_v30  ;;  %v2668_v32 = vpop.f32.mrb[49].mxu0 }
0x1646   : > { %v2136_v33 = vpop.f32.mrb[50].mxu0 }
0x1647   : > { %v2137_v34 = vadd.f32 %v2136_v33, %v2050_v30  ;;  %v2669_v36 = vpop.f32.mrb[51].mxu0  ;;  %v2140_v35 = vadd.f32 %v2134_v27, %v3446_v28 }
0x1649   : > { %v2142_v25 = vsel %vm317_vm0, %v2140_v35, 0.0  ;;  %v2141_v37 = vadd.f32 %v2137_v34, %v3449_v39  ;;  %v2793_v39 = vld [vmem:[%s3581_s6] sm:$0xff]  }
0x164a   : > { %2143 = vadd.xlane.f32.xlu0 %v2142_v25  ;;  %2671 = vmatpush3.bf16.msra.mxu1 %v2793_v39 }
0x164b   : > { %v2145_v38 = vsel %vm317_vm0, %v2141_v37, 0.0  ;;  %2672 = vmatprep.subr.bf16.mxu1 %v2959_v15 }
0x164c   : > { %2146 = vadd.xlane.f32.xlu1 %v2145_v38 }
0x164e   : > { %2673 = vmatpush3.bf16.msra.mxu1 %v2794_v47 }
0x16d7   : > { %v2144_v51 = vpop.xlane.xlu0 %2143 }
0x16d8   : > { %v2148_v29 = vmul.f32 0.03125, %v2144_v51 }
0x16d9   : > { %v2147_v40 = vpop.xlane.xlu1 %2146 }
0x16da   : > { %v2150_v44 = vsub.f32 %v2140_v35, %v2148_v29  ;;  %v2149_v16 = vmul.f32 0.03125, %v2147_v40 }
0x16dc   : > { %v2151_v41 = vsub.f32 %v2141_v37, %v2149_v16  ;;  %v2152_v53 = vmul.f32 %v2150_v44, %v2150_v44 }
0x16de   : > { %v2154_v43 = vsel %vm317_vm0, %v2152_v53, 0.0  ;;  %v2153_v46 = vmul.f32 %v2151_v41, %v2151_v41 }
0x16df   : > { %2155 = vadd.xlane.f32.xlu0 %v2154_v43 }
0x16e0   : > { %v2157_v28 = vsel %vm317_vm0, %v2153_v46, 0.0 }
0x16e1   : > { %2158 = vadd.xlane.f32.xlu1 %v2157_v28 }
0x176c   : > { %v2156_v48 = vpop.xlane.xlu0 %2155 }
0x176d   : > { %v2160_v49 = vmul.f32 0.03125, %v2156_v48 }
0x176e   : > { %v2159_v50 = vpop.xlane.xlu1 %2158 }
0x176f   : > { %v2162_v0 = vadd.f32 1e-05, %v2160_v49  ;;  %v2161_v52 = vmul.f32 0.03125, %v2159_v50 }
0x1771   : > { %2891 = vrsqrt.f32 %v2162_v0  ;;  %v2163_v1 = vadd.f32 1e-05, %v2161_v52 }
0x1773   : > { %2893 = vrsqrt.f32 %v2163_v1 }
0x177b   : > { %v2892_v54 = vpop.eup %2891 }
0x177c   : > { %v2166_v56 = vmul.f32 %v2892_v54, %v2150_v44 }
0x177d   : > { %v2894_v31 = vpop.eup %2893 }
0x177e   : > { %v2167_v57 = vmul.f32 %v2894_v31, %v2151_v41 }
0x1780   : > { %v2168_v15 = vpack.c.bf16 %v2167_v57, %v2166_v56 }
0x1782   : > { %2675 = vmatmul.mubr.msk.bf16.vlgmr.msra.gmra.mrb[44].mxu1 %vm317_vm0, %v2168_v15 }
0x1855   : > { %v2229_v42 = vpop.f32.mrb[44].mxu1 }
0x1856   : > { %v2230_v60 = vadd.f32 %v2404_v58, %v2229_v42  ;;  %v2676_v55 = vpop.f32.mrb[45].mxu1 }
0x1857   : > { %v2232_v61 = vpop.f32.mrb[46].mxu1 }
0x1858   : > { %2236 = vst [vmem:[%s298_s19] sm:$0xff] %v2230_v60  ;;  %v2233_v45 = vadd.f32 %v2404_v58, %v2232_v61  ;;  %v2677_v59 = vpop.f32.mrb[47].mxu1 }
0x185a   : > { %2237 = vst [vmem:[%s298_s19 + $0x8] sm:$0xff] %v2233_v45 }
0x185b   : > { %2908 = shalt.err (!%p2905_p3)
}
0x185c   : > { %s2909_s26 = scalar_lea.hbm %s3531_s20, 256  ;;  %s2913_s22 = scalar_lea.hbm %s3583_s8, 512 }
0x185d   : > { %p2910_p4 = scmp.ne.s32.totalorder %s3531_s20, %s2909_s26  ;;  %p2914_p9 = scmp.lt.u32.totalorder %s3531_s20, %s3583_s8 }
0x185e   : > { %p2915_p10 = scmp.lt.u32.totalorder %s2913_s22, %s2909_s26  ;;  %p2917_p12 = scmp.lt.u32.totalorder %s2909_s26, %s3531_s20 }
0x185f   : > { %p2911_p7 = pnand %p2910_p4, %p3061_p5 }
0x1860   : > { %p2916_p11 = por %p2915_p10, %p2914_p9 }
0x1861   : > { %p2912_p8 = pneg %p2911_p7 }
0x1862   : > { %p2918_p13 = por %p2917_p12, %p2916_p11 }
0x1864   : > { %p2919_p0 = pnand %p2918_p13, %p2912_p8 }
0x1866   : > { %2922 = shalt.err (!%p2919_p0)
}
0x1867   : > { %s2977_s9 = smov 128  }
0x1868   : > { %2678 = dma.vmem_to_hbm [thread:$0]  (%p3061_p5), %s3526_s21, 256, %s3531_s20, %s3533_s24, %s2977_s9, %s2977_s9, %s3600_s23  }
0x1869 PF: > { %p2684_p1 = scmp.ge.s32.totalorder %s2957_s30, 2  ;;  %s2267_s18 = sand.u32 1, %s2945_s27  }
0x186a   : > { %s2268_s12 = scalar_lea.sflag [#allocation3], %s2267_s18 }
0x186b   : > { %p2681_p2 = pnand %p2684_p1, %p3065_p6 }
0x186d   : > { %2940 = dma.done.wait (!%p2681_p2), %s2268_s12, 256  }
0x186e   : > { %2942 = vsyncadd (!%p2681_p2), %s2268_s12, 4294967040  ;;  %p18_p3 = scmp.ge.s32.totalorder %s3048_s11, 4   ;;  %s3603_s27 = smov %s2949_s28 }
0x186f   : > { %s3604_s28 = smov %s2953_s29  ;;  %s3605_s29 = smov %s3059_s14 }
0x1870   : > { %s3606_s30 = smov %s3048_s11  ;;  %20 = sbr.rel (!%p18_p3) target bundleno = 3 (0x3), region = 92 }
0x1877   :  { %2273 = vsyncpa [#allocation3], 1 }
0x1878   :  { %2275 = vsyncpa [#allocation3 + $0x1], 1 }

</bundles_post_ra>
